<compile_context>
chip_gen: v7x
topology: tpu7x:2x2x1
jax: 0.10.0
libtpu: 0.0.40
codegen_flags: <defaults>
</compile_context>

<pallas_src>
import functools

import jax
import jax.numpy as jnp
from jax.experimental import pallas as pl
from jax.experimental.pallas import tpu as pltpu


def _round_up(x, m):
    return (x + m - 1) // m * m


def _ds(start, size, stride):
    # Unit stride stays a plain contiguous slice.
    return pl.ds(start, size) if stride == 1 else pl.ds(start, size, stride)


def _vmem_limit_bytes():
    """~78% of physical VMEM per core; conservative 64 MiB fallback (v7x-safe)."""
    cap = 64 * 1024 * 1024
    try:
        cap = int(pltpu.get_tpu_info().vmem_capacity_bytes)
    except Exception:
        pass
    return max(32 * 1024 * 1024, int(cap * 0.78))


def _mxu_is_256wide():
    """True on v6e / v7x (256-wide MXU) — enables block-diagonal group pairing."""
    try:
        kind = jax.devices()[0].device_kind.lower()
    except Exception:
        return False
    return ("v6" in kind) or ("v7" in kind)


def _pick_tile_h(OH, OWp, SH, KH, Wblk, Ct, OCt, acc_lanes, in_itemsize,
                 out_itemsize, weight_bytes, bias_bytes, budget, max_tile_h=None):
    """Pick (TH, nT) so the VMEM-resident blocks fit `budget`.

    TH need not divide OH: tiles are balanced (nT = ceil(OH/TH_max),
    TH = ceil(OH/nT)) and the padded output rows are sliced off by the wrapper.
    The cost model counts: double-buffered weights + bias (blocked specs),
    double-buffered halo'd input rows, double-buffered output tile and the f32
    accumulator scratch.
    """
    cap = OH if max_tile_h is None else max(1, min(OH, int(max_tile_h)))
    fixed = 2 * weight_bytes + 2 * bias_bytes

    def cost(th):
        hblk = (th - 1) * SH + KH
        return (fixed
                + 2 * hblk * Wblk * Ct * in_itemsize      # input halo double buffer
                + 2 * th * OWp * OCt * out_itemsize       # output double buffer
                + th * OWp * acc_lanes * 4)               # f32 accumulator

    th_max = 1
    for th in range(1, cap + 1):
        if cost(th) <= budget:
            th_max = th
    nT = -(-OH // th_max)          # fewest tiles first ...
    TH = -(-OH // nT)              # ... then balance them (minimal padded waste)
    return TH, nT


def _conv_kernel(x_hbm, w_ref, b_ref, o_ref, xbuf, sem, acc_ref, *,
                 TH, OWp, KH, KW, SH, SW, NGB, Kc, Nc, Hblk):
    """Compute one (batch n, H-tile t) output block.

    x_hbm  : (N, Hin, Wblk, Ct)       padded input, NHWC, left in HBM (pl.ANY)
    w_ref  : (KH, KW, Kc, OCt)        padded (possibly block-diag paired) weights
    b_ref  : (1, OCt) f32             padded bias (zeros if the module has none)
    o_ref  : (1, TH, OWp, OCt)        output tile (lane- and sublane-dense)
    xbuf   : (2, Hblk, Wblk, Ct)      double-buffered halo'd input rows (VMEM)
    sem    : (2,)                     DMA semaphores
    acc_ref: (TH*OWp, Nc) f32         per-group-block accumulator (VMEM scratch)
    """
    n = pl.program_id(0)
    t = pl.program_id(1)
    nT = pl.num_programs(1)
    slot = t % 2

    def issue(t_idx, sl):
        # Rows [t_idx*TH*SH, t_idx*TH*SH + Hblk) of image n -> buffer slot sl.
        pltpu.make_async_copy(
            x_hbm.at[n, pl.ds(t_idx * (TH * SH), Hblk)],
            xbuf.at[sl],
            sem.at[sl],
        ).start()

    # Prime the first tile of this image.  The H-tile axis runs sequentially per
    # image, so the prefetch chain is self-contained per batch element and stays
    # correct when the batch axis is sharded across TensorCores (megacore).
    @pl.when(t == 0)
    def _():
        issue(0, 0)

    # Prefetch the next tile of the same image while computing this one.
    @pl.when(t + 1 < nT)
    def _():
        issue(t + 1, 1 - slot)

    # Wait using the *same* descriptor that was started for tile t
    # (prime path: t == 0; prefetch path: issued at iteration t-1 with t_idx = t).
    pltpu.make_async_copy(
        x_hbm.at[n, pl.ds(t * (TH * SH), Hblk)],
        xbuf.at[slot],
        sem.at[slot],
    ).wait()

    # KH*KW MXU matmuls per group block: (TH*OWp, Kc) x (Kc, Nc), f32 accumulation
    # in VMEM scratch; taps sliced straight from the buffer Ref.  OWp % 8 == 0 so
    # the (TH, OWp, Kc) -> (TH*OWp, Kc) reshape is relayout-free.
    for gb in range(NGB):
        c0 = gb * Kc
        o0 = gb * Nc
        for kh in range(KH):
            for kw in range(KW):
                patch = xbuf[slot,
                             _ds(kh, TH, SH),
                             _ds(kw, OWp, SW),
                             pl.ds(c0, Kc)]                     # (TH, OWp, Kc)
                contrib = jnp.dot(patch.reshape(TH * OWp, Kc),
                                  w_ref[kh, kw, :, o0:o0 + Nc],
                                  preferred_element_type=jnp.float32)
                if kh == 0 and kw == 0:
                    acc_ref[...] = contrib
                else:
                    acc_ref[...] += contrib
        # Fused bias epilogue + lane/sublane-dense store (no concat, no wrapper pass).
        out_blk = acc_ref[...] + b_ref[:, o0:o0 + Nc]
        o_ref[0, :, :, o0:o0 + Nc] = (
            out_blk.reshape(TH, OWp, Nc).astype(o_ref.dtype))


def conv2d_static_same_padding(x, weight, *, kernel_size, stride, groups=1,
                               bias=None, compute_dtype=jnp.bfloat16,
                               max_tile_h=None, group_pair=None):
    """x: (N, Cin, H, W) NCHW; weight: (OC, Cin//groups, KH, KW) (PyTorch layout).

    compute_dtype: operand dtype for the MXU (default bf16; accumulation and
    output stay f32/x.dtype).  group_pair: None = auto (256-wide MXU only),
    True/False force block-diagonal pairing of adjacent groups on/off.
    """
    KH, KW = kernel_size
    SH, SW = stride
    ph, pw = (KH - 1) // 2, (KW - 1) // 2      # ZeroPad2d((pw, pw, ph, ph))

    N, Cin, H, W = x.shape
    OC = weight.shape[0]
    G = groups
    Cg, OCg = Cin // G, OC // G
    Cgp, OCgp = _round_up(Cg, 128), _round_up(OCg, 128)   # lane-dense channels
    Ct, OCt = G * Cgp, G * OCgp

    Hp, Wp = H + 2 * ph, W + 2 * pw
    OH = (Hp - KH) // SH + 1
    OW = (Wp - KW) // SW + 1

    # Sublane-aligned output width; the kernel computes OWp columns and the
    # extras (fed by zero-padded input columns) are sliced off afterwards.
    OWp = _round_up(OW, 8)
    Wblk = _round_up(max((OWp - 1) * SW + KW, Wp), 8)

    # Block-diagonal group pairing fills a 256-wide MXU (v6e/v7x) with two
    # adjacent groups per matmul; on 128-wide MXUs keep per-group 128x128 dots.
    if group_pair is None:
        group_pair = _mxu_is_256wide()
    GB = 2 if (group_pair and G >= 2 and G % 2 == 0
               and Cgp == 128 and OCgp == 128) else 1
    NGB = G // GB
    Kc, Nc = GB * Cgp, GB * OCgp

    x_dt = x.dtype if compute_dtype is None else jnp.dtype(compute_dtype)
    out_dt = x.dtype
    in_itemsize = jnp.dtype(x_dt).itemsize
    out_itemsize = jnp.dtype(out_dt).itemsize
    weight_bytes = KH * KW * Kc * OCt * in_itemsize
    bias_bytes = OCt * 4

    vmem_limit = _vmem_limit_bytes()
    TH, nT = _pick_tile_h(OH, OWp, SH, KH, Wblk, Ct, OCt, Nc, in_itemsize,
                          out_itemsize, weight_bytes, bias_bytes,
                          budget=vmem_limit // 2, max_tile_h=max_tile_h)
    OHt = nT * TH                               # padded output rows
    Hblk = (TH - 1) * SH + KH                   # halo'd input rows per tile
    Hin = max((OHt - 1) * SH + KH, Hp)          # input rows the tiles may touch

    # Single fused pad pass (per-group channel pad + spatial zero pad including
    # the OHt/OWp overshoot), one transpose to NHWC with channels on the lanes.
    x_g = x.reshape(N, G, Cg, H, W)
    x_g = jnp.pad(x_g, ((0, 0), (0, 0), (0, Cgp - Cg),
                        (ph, Hin - ph - H), (pw, Wblk - pw - W)))
    x_nhwc = jnp.transpose(x_g, (0, 3, 4, 1, 2)).reshape(N, Hin, Wblk, Ct)
    if compute_dtype is not None:
        x_nhwc = x_nhwc.astype(compute_dtype)

    # Weights: (OC, Cg, KH, KW) -> (KH, KW, Kc, OCt), zero-padded per group;
    # for GB == 2 adjacent groups are packed block-diagonally per tap.
    w_g = weight.reshape(G, OCg, Cg, KH, KW)
    w_g = jnp.pad(w_g, ((0, 0), (0, OCgp - OCg), (0, Cgp - Cg), (0, 0), (0, 0)))
    w_t = jnp.transpose(w_g, (3, 4, 0, 2, 1))           # (KH, KW, G, Cgp, OCgp)
    if GB == 1:
        w_p = jnp.transpose(w_t, (0, 1, 3, 2, 4)).reshape(KH, KW, Cgp, OCt)
    else:
        w_pair = w_t.reshape(KH, KW, NGB, 2, Cgp, OCgp)
        zero = jnp.zeros_like(w_pair[..., 0, :, :])
        top = jnp.concatenate([w_pair[..., 0, :, :], zero], axis=-1)
        bot = jnp.concatenate([zero, w_pair[..., 1, :, :]], axis=-1)
        w_bd = jnp.concatenate([top, bot], axis=-2)     # (KH,KW,NGB,2Cgp,2OCgp)
        w_p = jnp.transpose(w_bd, (0, 1, 3, 2, 4)).reshape(KH, KW, Kc, OCt)
    if compute_dtype is not None:
        w_p = w_p.astype(compute_dtype)

    # Bias fused into the kernel epilogue (f32, zeros when the module has none).
    if bias is None:
        b_p = jnp.zeros((1, OCt), jnp.float32)
    else:
        b_g = jnp.pad(bias.reshape(G, OCg).astype(jnp.float32),
                      ((0, 0), (0, OCgp - OCg)))
        b_p = b_g.reshape(1, OCt)

    kernel = functools.partial(
        _conv_kernel, TH=TH, OWp=OWp, KH=KH, KW=KW, SH=SH, SW=SW,
        NGB=NGB, Kc=Kc, Nc=Nc, Hblk=Hblk)

    out_p = pl.pallas_call(
        kernel,
        out_shape=jax.ShapeDtypeStruct((N, OHt, OWp, OCt), out_dt),
        grid_spec=pltpu.PrefetchScalarGridSpec(
            num_scalar_prefetch=0,
            grid=(N, nT),
            in_specs=[
                pl.BlockSpec(memory_space=pl.ANY),               # manual halo DMA
                pl.BlockSpec((KH, KW, Kc, OCt), lambda n, t: (0, 0, 0, 0)),
                pl.BlockSpec((1, OCt), lambda n, t: (0, 0)),
            ],
            out_specs=pl.BlockSpec((1, TH, OWp, OCt), lambda n, t: (n, t, 0, 0)),
            scratch_shapes=[
                pltpu.VMEM((2, Hblk, Wblk, Ct), x_nhwc.dtype),
                pltpu.SemaphoreType.DMA((2,)),
                pltpu.VMEM((TH * OWp, Nc), jnp.float32),
            ]),
        compiler_params=pltpu.CompilerParams(
            dimension_semantics=("parallel", "arbitrary"),
            vmem_limit_bytes=vmem_limit),
    )(x_nhwc, w_p, b_p)

    # Drop the row/column/channel padding and go back to NCHW.
    out = out_p[:, :OH, :OW, :]
    out = out.reshape(N, OH, OW, G, OCgp)[..., :OCg].reshape(N, OH, OW, OC)
    return jnp.transpose(out, (0, 3, 1, 2))


def _reference(x, weight, *, kernel_size, stride, groups):
    ph, pw = (kernel_size[0] - 1) // 2, (kernel_size[1] - 1) // 2
    return jax.lax.conv_general_dilated(
        x, weight, window_strides=stride, padding=[(ph, ph), (pw, pw)],
        dimension_numbers=("NCHW", "OIHW", "NCHW"),
        feature_group_count=groups)


if __name__ == "__main__":
    key = jax.random.PRNGKey(0)
    k1, k2, k3, k4, k5, k6, k7 = jax.random.split(key, 7)

    # Config 1: module defaults (groups=1, bias=False), 3x3 / stride 1, f32 compute,
    # forced multi-tile H (exercises the double-buffered halo prefetch chain).
    x = jax.random.normal(k1, (2, 4, 16, 16), dtype=jnp.float32)
    w = jax.random.normal(k2, (8, 4, 3, 3), dtype=jnp.float32) * 0.1
    out = conv2d_static_same_padding(
        x, w, kernel_size=(3, 3), stride=(1, 1), groups=1,
        compute_dtype=jnp.float32, max_tile_h=8)
    out = jax.block_until_ready(out)
    ref = _reference(x, w, kernel_size=(3, 3), stride=(1, 1), groups=1)
    assert out.shape == ref.shape, (out.shape, ref.shape)
    assert jnp.allclose(out, ref, atol=1e-4, rtol=1e-4)

    # Config 2: grouped conv + fused bias, block-diagonal group pairing forced ON
    # (the 256-wide MXU path), single H tile.
    xg = jax.random.normal(k3, (2, 4, 16, 16), dtype=jnp.float32)
    wg = jax.random.normal(k4, (8, 2, 3, 3), dtype=jnp.float32) * 0.1
    bg = jax.random.normal(k5, (8,), dtype=jnp.float32) * 0.1
    refg = (_reference(xg, wg, kernel_size=(3, 3), stride=(1, 1), groups=2)
            + bg[None, :, None, None])
    outg = conv2d_static_same_padding(
        xg, wg, kernel_size=(3, 3), stride=(1, 1), groups=2, bias=bg,
        compute_dtype=jnp.float32, group_pair=True)
    outg = jax.block_until_ready(outg)
    assert outg.shape == refg.shape, (outg.shape, refg.shape)
    assert jnp.allclose(outg, refg, atol=1e-4, rtol=1e-4)

    # Config 2b: same grouped conv with pairing OFF (per-group 128x128 path, v5e style).
    outg2 = conv2d_static_same_padding(
        xg, wg, kernel_size=(3, 3), stride=(1, 1), groups=2, bias=bg,
        compute_dtype=jnp.float32, group_pair=False, max_tile_h=8)
    outg2 = jax.block_until_ready(outg2)
    assert jnp.allclose(outg2, refg, atol=1e-4, rtol=1e-4)

    # Config 3: defaults (bf16 compute, auto pairing), non-divisor OH/OW (15x15)
    # exercising the padded-OH / padded-OW path with balanced 4-row tiles.
    xo = jax.random.normal(k6, (2, 4, 15, 15), dtype=jnp.float32)
    wo = jax.random.normal(k7, (8, 4, 3, 3), dtype=jnp.float32) * 0.1
    outo = conv2d_static_same_padding(
        xo, wo, kernel_size=(3, 3), stride=(1, 1), groups=1, max_tile_h=4)
    outo = jax.block_until_ready(outo)
    refo = _reference(xo, wo, kernel_size=(3, 3), stride=(1, 1), groups=1)
    assert outo.shape == refo.shape, (outo.shape, refo.shape)
    assert jnp.allclose(outo, refo, atol=6e-2, rtol=5e-2)

    print("KERNEL_OK")
</pallas_src>

<mosaic_0001>
module attributes {stable_mosaic.version = 11 : i64} {
  func.func @_conv_kernel(%arg0: i32, %arg1: i32, %arg2: memref<2x18x24x128xf32, #tpu.memory_space<any>>, %arg3: memref<3x3x128x128xf32, #tpu.memory_space<vmem>>, %arg4: memref<1x128xf32, #tpu.memory_space<vmem>>, %arg5: memref<1x8x16x128xf32, #tpu.memory_space<vmem>>, %arg6: memref<2x10x24x128xf32, #tpu.memory_space<vmem>>, %arg7: memref<2x!tpu.dma_semaphore, #tpu.memory_space<semaphore_mem>>, %arg8: memref<128x128xf32, #tpu.memory_space<vmem>>) attributes {dimension_semantics = [#tpu.dimension_semantics<parallel>, #tpu.dimension_semantics<arbitrary>], iteration_bounds = array<i64: 2, 2>, scalar_prefetch = 0 : i64, scratch_operands = 3 : i64, tpu.core_type = #tpu.core_type<tc>, window_params = [{}, {pipeline_mode = #tpu.pipeline_mode<synchronous>, transform_indices = @transform_1, window_bounds = array<i64: 3, 3, 128, 128>}, {pipeline_mode = #tpu.pipeline_mode<synchronous>, transform_indices = @transform_2, window_bounds = array<i64: 1, 128>}, {transform_indices = @transform_3, window_bounds = array<i64: 1, 8, 16, 128>}]} {
    %c2_i32 = arith.constant 2 : i32
    %c0_i32 = arith.constant 0 : i32
    %0 = arith.cmpi eq, %c2_i32, %c0_i32 : i32
    %c1_i32 = arith.constant 1 : i32
    %1 = arith.select %0, %c1_i32, %c2_i32 : i32
    %2 = arith.remsi %arg1, %1 : i32
    %c0_i32_0 = arith.constant 0 : i32
    %3 = arith.cmpi ne, %2, %c0_i32_0 : i32
    %c0_i32_1 = arith.constant 0 : i32
    %4 = arith.cmpi slt, %2, %c0_i32_1 : i32
    %c0_i32_2 = arith.constant 0 : i32
    %5 = arith.cmpi slt, %1, %c0_i32_2 : i32
    %6 = arith.xori %4, %5 : i1
    %7 = arith.andi %6, %3 : i1
    %8 = arith.addi %2, %1 : i32
    %9 = arith.select %7, %8, %2 : i32
    %c0_i32_3 = arith.constant 0 : i32
    %10 = arith.cmpi eq, %arg1, %c0_i32_3 : i32
    %11 = arith.extui %10 : i1 to i32
    %c0_i32_4 = arith.constant 0 : i32
    %12 = arith.cmpi ne, %11, %c0_i32_4 : i32
    scf.if %12 {
      %c0_i32_123 = arith.constant 0 : i32
      %c0_i32_124 = arith.constant 0 : i32
      %c0_i32_125 = arith.constant 0 : i32
      %c0_i32_126 = arith.constant 0 : i32
      %c0_i32_127 = arith.constant 0 : i32
      %120 = tpu.memref_slice %arg2[%arg0, %c0_i32_125, %c0_i32_126, %c0_i32_127] : memref<2x18x24x128xf32, #tpu.memory_space<any>> -> memref<1x10x24x128xf32, #tpu.memory_space<any>>
      %121 = tpu.memref_squeeze %120 : memref<1x10x24x128xf32, #tpu.memory_space<any>> -> memref<10x24x128xf32, #tpu.memory_space<any>>
      %c0_i32_128 = arith.constant 0 : i32
      %c0_i32_129 = arith.constant 0 : i32
      %c0_i32_130 = arith.constant 0 : i32
      %122 = tpu.memref_slice %arg6[%c0_i32_123, %c0_i32_128, %c0_i32_129, %c0_i32_130] : memref<2x10x24x128xf32, #tpu.memory_space<vmem>> -> memref<1x10x24x128xf32, #tpu.memory_space<vmem>>
      %123 = tpu.memref_squeeze %122 : memref<1x10x24x128xf32, #tpu.memory_space<vmem>> -> memref<10x24x128xf32, #tpu.memory_space<vmem>>
      %124 = tpu.memref_slice %arg7[%c0_i32_124] : memref<2x!tpu.dma_semaphore, #tpu.memory_space<semaphore_mem>> -> memref<1x!tpu.dma_semaphore, #tpu.memory_space<semaphore_mem>>
      %125 = tpu.memref_squeeze %124 : memref<1x!tpu.dma_semaphore, #tpu.memory_space<semaphore_mem>> -> memref<!tpu.dma_semaphore, #tpu.memory_space<semaphore_mem>>
      tpu.enqueue_dma source(%121 : memref<10x24x128xf32, #tpu.memory_space<any>>) target(%123 : memref<10x24x128xf32, #tpu.memory_space<vmem>>) target_semaphore(%125 : memref<!tpu.dma_semaphore, #tpu.memory_space<semaphore_mem>>)
    } else {
    }
    %c1_i32_5 = arith.constant 1 : i32
    %13 = arith.addi %arg1, %c1_i32_5 : i32
    %c2_i32_6 = arith.constant 2 : i32
    %14 = arith.cmpi slt, %13, %c2_i32_6 : i32
    %15 = arith.extui %14 : i1 to i32
    %c0_i32_7 = arith.constant 0 : i32
    %16 = arith.cmpi ne, %15, %c0_i32_7 : i32
    scf.if %16 {
      %c1_i32_123 = arith.constant 1 : i32
      %120 = arith.addi %arg1, %c1_i32_123 : i32
      %c1_i32_124 = arith.constant 1 : i32
      %121 = arith.subi %c1_i32_124, %9 : i32
      %c8_i32_125 = arith.constant 8 : i32
      %122 = arith.muli %120, %c8_i32_125 : i32
      %c0_i32_126 = arith.constant 0 : i32
      %c0_i32_127 = arith.constant 0 : i32
      %123 = tpu.memref_slice %arg2[%arg0, %122, %c0_i32_126, %c0_i32_127] : memref<2x18x24x128xf32, #tpu.memory_space<any>> -> memref<1x10x24x128xf32, #tpu.memory_space<any>>
      %124 = tpu.memref_squeeze %123 : memref<1x10x24x128xf32, #tpu.memory_space<any>> -> memref<10x24x128xf32, #tpu.memory_space<any>>
      %c0_i32_128 = arith.constant 0 : i32
      %c0_i32_129 = arith.constant 0 : i32
      %c0_i32_130 = arith.constant 0 : i32
      %125 = tpu.memref_slice %arg6[%121, %c0_i32_128, %c0_i32_129, %c0_i32_130] : memref<2x10x24x128xf32, #tpu.memory_space<vmem>> -> memref<1x10x24x128xf32, #tpu.memory_space<vmem>>
      %126 = tpu.memref_squeeze %125 : memref<1x10x24x128xf32, #tpu.memory_space<vmem>> -> memref<10x24x128xf32, #tpu.memory_space<vmem>>
      %127 = tpu.memref_slice %arg7[%121] : memref<2x!tpu.dma_semaphore, #tpu.memory_space<semaphore_mem>> -> memref<1x!tpu.dma_semaphore, #tpu.memory_space<semaphore_mem>>
      %128 = tpu.memref_squeeze %127 : memref<1x!tpu.dma_semaphore, #tpu.memory_space<semaphore_mem>> -> memref<!tpu.dma_semaphore, #tpu.memory_space<semaphore_mem>>
      tpu.enqueue_dma source(%124 : memref<10x24x128xf32, #tpu.memory_space<any>>) target(%126 : memref<10x24x128xf32, #tpu.memory_space<vmem>>) target_semaphore(%128 : memref<!tpu.dma_semaphore, #tpu.memory_space<semaphore_mem>>)
    } else {
    }
    %c8_i32 = arith.constant 8 : i32
    %17 = arith.muli %arg1, %c8_i32 : i32
    %c0_i32_8 = arith.constant 0 : i32
    %c0_i32_9 = arith.constant 0 : i32
    %18 = tpu.memref_slice %arg2[%arg0, %17, %c0_i32_8, %c0_i32_9] : memref<2x18x24x128xf32, #tpu.memory_space<any>> -> memref<1x10x24x128xf32, #tpu.memory_space<any>>
    %19 = tpu.memref_squeeze %18 : memref<1x10x24x128xf32, #tpu.memory_space<any>> -> memref<10x24x128xf32, #tpu.memory_space<any>>
    %c0_i32_10 = arith.constant 0 : i32
    %c0_i32_11 = arith.constant 0 : i32
    %c0_i32_12 = arith.constant 0 : i32
    %20 = tpu.memref_slice %arg6[%9, %c0_i32_10, %c0_i32_11, %c0_i32_12] : memref<2x10x24x128xf32, #tpu.memory_space<vmem>> -> memref<1x10x24x128xf32, #tpu.memory_space<vmem>>
    %21 = tpu.memref_squeeze %20 : memref<1x10x24x128xf32, #tpu.memory_space<vmem>> -> memref<10x24x128xf32, #tpu.memory_space<vmem>>
    %22 = tpu.memref_slice %arg7[%9] : memref<2x!tpu.dma_semaphore, #tpu.memory_space<semaphore_mem>> -> memref<1x!tpu.dma_semaphore, #tpu.memory_space<semaphore_mem>>
    %23 = tpu.memref_squeeze %22 : memref<1x!tpu.dma_semaphore, #tpu.memory_space<semaphore_mem>> -> memref<!tpu.dma_semaphore, #tpu.memory_space<semaphore_mem>>
    tpu.wait_dma2 semaphore(%23 : memref<!tpu.dma_semaphore, #tpu.memory_space<semaphore_mem>>) src(%19 : memref<10x24x128xf32, #tpu.memory_space<any>>) dst(%21 : memref<10x24x128xf32, #tpu.memory_space<vmem>>)
    %24 = arith.index_cast %9 : i32 to index
    %c0 = arith.constant 0 : index
    %c0_13 = arith.constant 0 : index
    %c0_14 = arith.constant 0 : index
    %25 = vector.load %arg6[%24, %c0, %c0_13, %c0_14] : memref<2x10x24x128xf32, #tpu.memory_space<vmem>>, vector<1x8x16x128xf32>
    %26 = vector.shape_cast %25 : vector<1x8x16x128xf32> to vector<8x16x128xf32>
    %27 = vector.shape_cast %26 : vector<8x16x128xf32> to vector<128x128xf32>
    %c0_15 = arith.constant 0 : index
    %c0_16 = arith.constant 0 : index
    %c0_17 = arith.constant 0 : index
    %c0_18 = arith.constant 0 : index
    %28 = vector.load %arg3[%c0_15, %c0_16, %c0_17, %c0_18] : memref<3x3x128x128xf32, #tpu.memory_space<vmem>>, vector<1x1x128x128xf32>
    %29 = vector.shape_cast %28 : vector<1x1x128x128xf32> to vector<128x128xf32>
    %cst = arith.constant dense<0.000000e+00> : vector<128x128xf32>
    %30 = tpu.matmul %27, %29, %cst {dimension_numbers = #tpu.dot_dimension_numbers<[1], [0], [0], [1], [0, 0, 1, 1], [], []>} : vector<128x128xf32>, vector<128x128xf32>, vector<128x128xf32> -> vector<128x128xf32>
    %c0_19 = arith.constant 0 : index
    %c0_20 = arith.constant 0 : index
    %31 = vector.load %arg8[%c0_19, %c0_20] : memref<128x128xf32, #tpu.memory_space<vmem>>, vector<128x128xf32>
    tpu.vector_store %arg8[%c0_19, %c0_20], %30 {strides = array<i32>} : memref<128x128xf32, #tpu.memory_space<vmem>>, vector<128x128xf32>,
    %32 = arith.index_cast %9 : i32 to index
    %c0_21 = arith.constant 0 : index
    %c1 = arith.constant 1 : index
    %c0_22 = arith.constant 0 : index
    %33 = vector.load %arg6[%32, %c0_21, %c1, %c0_22] : memref<2x10x24x128xf32, #tpu.memory_space<vmem>>, vector<1x8x16x128xf32>
    %34 = vector.shape_cast %33 : vector<1x8x16x128xf32> to vector<8x16x128xf32>
    %35 = vector.shape_cast %34 : vector<8x16x128xf32> to vector<128x128xf32>
    %c0_23 = arith.constant 0 : index
    %c1_24 = arith.constant 1 : index
    %c0_25 = arith.constant 0 : index
    %c0_26 = arith.constant 0 : index
    %36 = vector.load %arg3[%c0_23, %c1_24, %c0_25, %c0_26] : memref<3x3x128x128xf32, #tpu.memory_space<vmem>>, vector<1x1x128x128xf32>
    %37 = vector.shape_cast %36 : vector<1x1x128x128xf32> to vector<128x128xf32>
    %cst_27 = arith.constant dense<0.000000e+00> : vector<128x128xf32>
    %38 = tpu.matmul %35, %37, %cst_27 {dimension_numbers = #tpu.dot_dimension_numbers<[1], [0], [0], [1], [0, 0, 1, 1], [], []>} : vector<128x128xf32>, vector<128x128xf32>, vector<128x128xf32> -> vector<128x128xf32>
    %c0_28 = arith.constant 0 : index
    %c0_29 = arith.constant 0 : index
    %39 = vector.load %arg8[%c0_28, %c0_29] : memref<128x128xf32, #tpu.memory_space<vmem>>, vector<128x128xf32>
    %40 = arith.addf %39, %38 : vector<128x128xf32>
    %c0_30 = arith.constant 0 : index
    %c0_31 = arith.constant 0 : index
    %41 = vector.load %arg8[%c0_30, %c0_31] : memref<128x128xf32, #tpu.memory_space<vmem>>, vector<128x128xf32>
    tpu.vector_store %arg8[%c0_30, %c0_31], %40 {strides = array<i32>} : memref<128x128xf32, #tpu.memory_space<vmem>>, vector<128x128xf32>,
    %42 = arith.index_cast %9 : i32 to index
    %c0_32 = arith.constant 0 : index
    %c2 = arith.constant 2 : index
    %c0_33 = arith.constant 0 : index
    %43 = vector.load %arg6[%42, %c0_32, %c2, %c0_33] : memref<2x10x24x128xf32, #tpu.memory_space<vmem>>, vector<1x8x16x128xf32>
    %44 = vector.shape_cast %43 : vector<1x8x16x128xf32> to vector<8x16x128xf32>
    %45 = vector.shape_cast %44 : vector<8x16x128xf32> to vector<128x128xf32>
    %c0_34 = arith.constant 0 : index
    %c2_35 = arith.constant 2 : index
    %c0_36 = arith.constant 0 : index
    %c0_37 = arith.constant 0 : index
    %46 = vector.load %arg3[%c0_34, %c2_35, %c0_36, %c0_37] : memref<3x3x128x128xf32, #tpu.memory_space<vmem>>, vector<1x1x128x128xf32>
    %47 = vector.shape_cast %46 : vector<1x1x128x128xf32> to vector<128x128xf32>
    %cst_38 = arith.constant dense<0.000000e+00> : vector<128x128xf32>
    %48 = tpu.matmul %45, %47, %cst_38 {dimension_numbers = #tpu.dot_dimension_numbers<[1], [0], [0], [1], [0, 0, 1, 1], [], []>} : vector<128x128xf32>, vector<128x128xf32>, vector<128x128xf32> -> vector<128x128xf32>
    %c0_39 = arith.constant 0 : index
    %c0_40 = arith.constant 0 : index
    %49 = vector.load %arg8[%c0_39, %c0_40] : memref<128x128xf32, #tpu.memory_space<vmem>>, vector<128x128xf32>
    %50 = arith.addf %49, %48 : vector<128x128xf32>
    %c0_41 = arith.constant 0 : index
    %c0_42 = arith.constant 0 : index
    %51 = vector.load %arg8[%c0_41, %c0_42] : memref<128x128xf32, #tpu.memory_space<vmem>>, vector<128x128xf32>
    tpu.vector_store %arg8[%c0_41, %c0_42], %50 {strides = array<i32>} : memref<128x128xf32, #tpu.memory_space<vmem>>, vector<128x128xf32>,
    %52 = arith.index_cast %9 : i32 to index
    %c1_43 = arith.constant 1 : index
    %c0_44 = arith.constant 0 : index
    %c0_45 = arith.constant 0 : index
    %53 = vector.load %arg6[%52, %c1_43, %c0_44, %c0_45] : memref<2x10x24x128xf32, #tpu.memory_space<vmem>>, vector<1x8x16x128xf32>
    %54 = vector.shape_cast %53 : vector<1x8x16x128xf32> to vector<8x16x128xf32>
    %55 = vector.shape_cast %54 : vector<8x16x128xf32> to vector<128x128xf32>
    %c1_46 = arith.constant 1 : index
    %c0_47 = arith.constant 0 : index
    %c0_48 = arith.constant 0 : index
    %c0_49 = arith.constant 0 : index
    %56 = vector.load %arg3[%c1_46, %c0_47, %c0_48, %c0_49] : memref<3x3x128x128xf32, #tpu.memory_space<vmem>>, vector<1x1x128x128xf32>
    %57 = vector.shape_cast %56 : vector<1x1x128x128xf32> to vector<128x128xf32>
    %cst_50 = arith.constant dense<0.000000e+00> : vector<128x128xf32>
    %58 = tpu.matmul %55, %57, %cst_50 {dimension_numbers = #tpu.dot_dimension_numbers<[1], [0], [0], [1], [0, 0, 1, 1], [], []>} : vector<128x128xf32>, vector<128x128xf32>, vector<128x128xf32> -> vector<128x128xf32>
    %c0_51 = arith.constant 0 : index
    %c0_52 = arith.constant 0 : index
    %59 = vector.load %arg8[%c0_51, %c0_52] : memref<128x128xf32, #tpu.memory_space<vmem>>, vector<128x128xf32>
    %60 = arith.addf %59, %58 : vector<128x128xf32>
    %c0_53 = arith.constant 0 : index
    %c0_54 = arith.constant 0 : index
    %61 = vector.load %arg8[%c0_53, %c0_54] : memref<128x128xf32, #tpu.memory_space<vmem>>, vector<128x128xf32>
    tpu.vector_store %arg8[%c0_53, %c0_54], %60 {strides = array<i32>} : memref<128x128xf32, #tpu.memory_space<vmem>>, vector<128x128xf32>,
    %62 = arith.index_cast %9 : i32 to index
    %c1_55 = arith.constant 1 : index
    %c1_56 = arith.constant 1 : index
    %c0_57 = arith.constant 0 : index
    %63 = vector.load %arg6[%62, %c1_55, %c1_56, %c0_57] : memref<2x10x24x128xf32, #tpu.memory_space<vmem>>, vector<1x8x16x128xf32>
    %64 = vector.shape_cast %63 : vector<1x8x16x128xf32> to vector<8x16x128xf32>
    %65 = vector.shape_cast %64 : vector<8x16x128xf32> to vector<128x128xf32>
    %c1_58 = arith.constant 1 : index
    %c1_59 = arith.constant 1 : index
    %c0_60 = arith.constant 0 : index
    %c0_61 = arith.constant 0 : index
    %66 = vector.load %arg3[%c1_58, %c1_59, %c0_60, %c0_61] : memref<3x3x128x128xf32, #tpu.memory_space<vmem>>, vector<1x1x128x128xf32>
    %67 = vector.shape_cast %66 : vector<1x1x128x128xf32> to vector<128x128xf32>
    %cst_62 = arith.constant dense<0.000000e+00> : vector<128x128xf32>
    %68 = tpu.matmul %65, %67, %cst_62 {dimension_numbers = #tpu.dot_dimension_numbers<[1], [0], [0], [1], [0, 0, 1, 1], [], []>} : vector<128x128xf32>, vector<128x128xf32>, vector<128x128xf32> -> vector<128x128xf32>
    %c0_63 = arith.constant 0 : index
    %c0_64 = arith.constant 0 : index
    %69 = vector.load %arg8[%c0_63, %c0_64] : memref<128x128xf32, #tpu.memory_space<vmem>>, vector<128x128xf32>
    %70 = arith.addf %69, %68 : vector<128x128xf32>
    %c0_65 = arith.constant 0 : index
    %c0_66 = arith.constant 0 : index
    %71 = vector.load %arg8[%c0_65, %c0_66] : memref<128x128xf32, #tpu.memory_space<vmem>>, vector<128x128xf32>
    tpu.vector_store %arg8[%c0_65, %c0_66], %70 {strides = array<i32>} : memref<128x128xf32, #tpu.memory_space<vmem>>, vector<128x128xf32>,
    %72 = arith.index_cast %9 : i32 to index
    %c1_67 = arith.constant 1 : index
    %c2_68 = arith.constant 2 : index
    %c0_69 = arith.constant 0 : index
    %73 = vector.load %arg6[%72, %c1_67, %c2_68, %c0_69] : memref<2x10x24x128xf32, #tpu.memory_space<vmem>>, vector<1x8x16x128xf32>
    %74 = vector.shape_cast %73 : vector<1x8x16x128xf32> to vector<8x16x128xf32>
    %75 = vector.shape_cast %74 : vector<8x16x128xf32> to vector<128x128xf32>
    %c1_70 = arith.constant 1 : index
    %c2_71 = arith.constant 2 : index
    %c0_72 = arith.constant 0 : index
    %c0_73 = arith.constant 0 : index
    %76 = vector.load %arg3[%c1_70, %c2_71, %c0_72, %c0_73] : memref<3x3x128x128xf32, #tpu.memory_space<vmem>>, vector<1x1x128x128xf32>
    %77 = vector.shape_cast %76 : vector<1x1x128x128xf32> to vector<128x128xf32>
    %cst_74 = arith.constant dense<0.000000e+00> : vector<128x128xf32>
    %78 = tpu.matmul %75, %77, %cst_74 {dimension_numbers = #tpu.dot_dimension_numbers<[1], [0], [0], [1], [0, 0, 1, 1], [], []>} : vector<128x128xf32>, vector<128x128xf32>, vector<128x128xf32> -> vector<128x128xf32>
    %c0_75 = arith.constant 0 : index
    %c0_76 = arith.constant 0 : index
    %79 = vector.load %arg8[%c0_75, %c0_76] : memref<128x128xf32, #tpu.memory_space<vmem>>, vector<128x128xf32>
    %80 = arith.addf %79, %78 : vector<128x128xf32>
    %c0_77 = arith.constant 0 : index
    %c0_78 = arith.constant 0 : index
    %81 = vector.load %arg8[%c0_77, %c0_78] : memref<128x128xf32, #tpu.memory_space<vmem>>, vector<128x128xf32>
    tpu.vector_store %arg8[%c0_77, %c0_78], %80 {strides = array<i32>} : memref<128x128xf32, #tpu.memory_space<vmem>>, vector<128x128xf32>,
    %82 = arith.index_cast %9 : i32 to index
    %c2_79 = arith.constant 2 : index
    %c0_80 = arith.constant 0 : index
    %c0_81 = arith.constant 0 : index
    %83 = vector.load %arg6[%82, %c2_79, %c0_80, %c0_81] : memref<2x10x24x128xf32, #tpu.memory_space<vmem>>, vector<1x8x16x128xf32>
    %84 = vector.shape_cast %83 : vector<1x8x16x128xf32> to vector<8x16x128xf32>
    %85 = vector.shape_cast %84 : vector<8x16x128xf32> to vector<128x128xf32>
    %c2_82 = arith.constant 2 : index
    %c0_83 = arith.constant 0 : index
    %c0_84 = arith.constant 0 : index
    %c0_85 = arith.constant 0 : index
    %86 = vector.load %arg3[%c2_82, %c0_83, %c0_84, %c0_85] : memref<3x3x128x128xf32, #tpu.memory_space<vmem>>, vector<1x1x128x128xf32>
    %87 = vector.shape_cast %86 : vector<1x1x128x128xf32> to vector<128x128xf32>
    %cst_86 = arith.constant dense<0.000000e+00> : vector<128x128xf32>
    %88 = tpu.matmul %85, %87, %cst_86 {dimension_numbers = #tpu.dot_dimension_numbers<[1], [0], [0], [1], [0, 0, 1, 1], [], []>} : vector<128x128xf32>, vector<128x128xf32>, vector<128x128xf32> -> vector<128x128xf32>
    %c0_87 = arith.constant 0 : index
    %c0_88 = arith.constant 0 : index
    %89 = vector.load %arg8[%c0_87, %c0_88] : memref<128x128xf32, #tpu.memory_space<vmem>>, vector<128x128xf32>
    %90 = arith.addf %89, %88 : vector<128x128xf32>
    %c0_89 = arith.constant 0 : index
    %c0_90 = arith.constant 0 : index
    %91 = vector.load %arg8[%c0_89, %c0_90] : memref<128x128xf32, #tpu.memory_space<vmem>>, vector<128x128xf32>
    tpu.vector_store %arg8[%c0_89, %c0_90], %90 {strides = array<i32>} : memref<128x128xf32, #tpu.memory_space<vmem>>, vector<128x128xf32>,
    %92 = arith.index_cast %9 : i32 to index
    %c2_91 = arith.constant 2 : index
    %c1_92 = arith.constant 1 : index
    %c0_93 = arith.constant 0 : index
    %93 = vector.load %arg6[%92, %c2_91, %c1_92, %c0_93] : memref<2x10x24x128xf32, #tpu.memory_space<vmem>>, vector<1x8x16x128xf32>
    %94 = vector.shape_cast %93 : vector<1x8x16x128xf32> to vector<8x16x128xf32>
    %95 = vector.shape_cast %94 : vector<8x16x128xf32> to vector<128x128xf32>
    %c2_94 = arith.constant 2 : index
    %c1_95 = arith.constant 1 : index
    %c0_96 = arith.constant 0 : index
    %c0_97 = arith.constant 0 : index
    %96 = vector.load %arg3[%c2_94, %c1_95, %c0_96, %c0_97] : memref<3x3x128x128xf32, #tpu.memory_space<vmem>>, vector<1x1x128x128xf32>
    %97 = vector.shape_cast %96 : vector<1x1x128x128xf32> to vector<128x128xf32>
    %cst_98 = arith.constant dense<0.000000e+00> : vector<128x128xf32>
    %98 = tpu.matmul %95, %97, %cst_98 {dimension_numbers = #tpu.dot_dimension_numbers<[1], [0], [0], [1], [0, 0, 1, 1], [], []>} : vector<128x128xf32>, vector<128x128xf32>, vector<128x128xf32> -> vector<128x128xf32>
    %c0_99 = arith.constant 0 : index
    %c0_100 = arith.constant 0 : index
    %99 = vector.load %arg8[%c0_99, %c0_100] : memref<128x128xf32, #tpu.memory_space<vmem>>, vector<128x128xf32>
    %100 = arith.addf %99, %98 : vector<128x128xf32>
    %c0_101 = arith.constant 0 : index
    %c0_102 = arith.constant 0 : index
    %101 = vector.load %arg8[%c0_101, %c0_102] : memref<128x128xf32, #tpu.memory_space<vmem>>, vector<128x128xf32>
    tpu.vector_store %arg8[%c0_101, %c0_102], %100 {strides = array<i32>} : memref<128x128xf32, #tpu.memory_space<vmem>>, vector<128x128xf32>,
    %102 = arith.index_cast %9 : i32 to index
    %c2_103 = arith.constant 2 : index
    %c2_104 = arith.constant 2 : index
    %c0_105 = arith.constant 0 : index
    %103 = vector.load %arg6[%102, %c2_103, %c2_104, %c0_105] : memref<2x10x24x128xf32, #tpu.memory_space<vmem>>, vector<1x8x16x128xf32>
    %104 = vector.shape_cast %103 : vector<1x8x16x128xf32> to vector<8x16x128xf32>
    %105 = vector.shape_cast %104 : vector<8x16x128xf32> to vector<128x128xf32>
    %c2_106 = arith.constant 2 : index
    %c2_107 = arith.constant 2 : index
    %c0_108 = arith.constant 0 : index
    %c0_109 = arith.constant 0 : index
    %106 = vector.load %arg3[%c2_106, %c2_107, %c0_108, %c0_109] : memref<3x3x128x128xf32, #tpu.memory_space<vmem>>, vector<1x1x128x128xf32>
    %107 = vector.shape_cast %106 : vector<1x1x128x128xf32> to vector<128x128xf32>
    %cst_110 = arith.constant dense<0.000000e+00> : vector<128x128xf32>
    %108 = tpu.matmul %105, %107, %cst_110 {dimension_numbers = #tpu.dot_dimension_numbers<[1], [0], [0], [1], [0, 0, 1, 1], [], []>} : vector<128x128xf32>, vector<128x128xf32>, vector<128x128xf32> -> vector<128x128xf32>
    %c0_111 = arith.constant 0 : index
    %c0_112 = arith.constant 0 : index
    %109 = vector.load %arg8[%c0_111, %c0_112] : memref<128x128xf32, #tpu.memory_space<vmem>>, vector<128x128xf32>
    %110 = arith.addf %109, %108 : vector<128x128xf32>
    %c0_113 = arith.constant 0 : index
    %c0_114 = arith.constant 0 : index
    %111 = vector.load %arg8[%c0_113, %c0_114] : memref<128x128xf32, #tpu.memory_space<vmem>>, vector<128x128xf32>
    tpu.vector_store %arg8[%c0_113, %c0_114], %110 {strides = array<i32>} : memref<128x128xf32, #tpu.memory_space<vmem>>, vector<128x128xf32>,
    %c0_115 = arith.constant 0 : index
    %c0_116 = arith.constant 0 : index
    %112 = vector.load %arg8[%c0_115, %c0_116] : memref<128x128xf32, #tpu.memory_space<vmem>>, vector<128x128xf32>
    %c0_117 = arith.constant 0 : index
    %c0_118 = arith.constant 0 : index
    %113 = vector.load %arg4[%c0_117, %c0_118] : memref<1x128xf32, #tpu.memory_space<vmem>>, vector<1x128xf32>
    %114 = vector.broadcast %113 : vector<1x128xf32> to vector<128x128xf32>
    %115 = arith.addf %112, %114 : vector<128x128xf32>
    %116 = vector.shape_cast %115 : vector<128x128xf32> to vector<8x16x128xf32>
    %c0_119 = arith.constant 0 : index
    %c0_120 = arith.constant 0 : index
    %c0_121 = arith.constant 0 : index
    %c0_122 = arith.constant 0 : index
    %117 = vector.load %arg5[%c0_119, %c0_120, %c0_121, %c0_122] : memref<1x8x16x128xf32, #tpu.memory_space<vmem>>, vector<1x8x16x128xf32>
    %118 = vector.shape_cast %117 : vector<1x8x16x128xf32> to vector<8x16x128xf32>
    %119 = vector.shape_cast %116 : vector<8x16x128xf32> to vector<1x8x16x128xf32>
    tpu.vector_store %arg5[%c0_119, %c0_120, %c0_121, %c0_122], %119 {strides = array<i32>} : memref<1x8x16x128xf32, #tpu.memory_space<vmem>>, vector<1x8x16x128xf32>,
    return
  }
  func.func @transform_1(%arg0: i32, %arg1: i32) -> (i32, i32, i32, i32) {
    %c0_i32 = arith.constant 0 : i32
    %c0_i32_0 = arith.constant 0 : i32
    %c0_i32_1 = arith.constant 0 : i32
    %c0_i32_2 = arith.constant 0 : i32
    %c0_i32_3 = arith.constant 0 : i32
    return %c0_i32, %c0_i32_0, %c0_i32_1, %c0_i32_2 : i32, i32, i32, i32
  }
  func.func @transform_2(%arg0: i32, %arg1: i32) -> (i32, i32) {
    %c0_i32 = arith.constant 0 : i32
    %c0_i32_0 = arith.constant 0 : i32
    %c0_i32_1 = arith.constant 0 : i32
    return %c0_i32, %c0_i32_0 : i32, i32
  }
  func.func @transform_3(%arg0: i32, %arg1: i32) -> (i32, i32, i32, i32) {
    %c0_i32 = arith.constant 0 : i32
    %c0_i32_0 = arith.constant 0 : i32
    %c0_i32_1 = arith.constant 0 : i32
    return %arg0, %arg1, %c0_i32, %c0_i32_0 : i32, i32, i32, i32
  }
}

</mosaic_0001>

<bundles_post_ra>
// kernel: tpu_custom_call.1
= control target key start
LH: loop header
LB: loop body
LE: loop exit
PB: predicated region body
PF: predicated region fallthrough
CT: control target
= control target key end

     0   :  { %s4642_s0 = inlined_call_operand.hbm [shape: f32[2,18,24,128], index: 0, kind: input, shape index: {}]   ;;  %s4643_s1 = inlined_call_operand.hbm [shape: f32[3,3,128,128], index: 1, kind: input, shape index: {}]   ;;  %s4644_s2 = inlined_call_operand.vmem [shape: f32[1,128], index: 2, kind: input, shape index: {}]   ;;  %s4645_s3 = inlined_call_operand.hbm [shape: f32[2,16,16,128], index: 3, kind: output, shape index: {}]  }
   0x1   :  { %4657 = sst [smem:[#allocation23_spill]] %s4643_s1 }
   0x2   :  { %8 = vsyncpa [#allocation6], 0 }
   0x3   :  { %9 = vsyncpa [#allocation7], 0 }
   0x4   :  { %11 = vsyncpa [#allocation7 + $0x1], 0  ;;  %s4055_s12 = smov 0   ;;  %s4057_s13 = smov 0  }
   0x5   :  { %s4059_s14 = smov 0   ;;  %s4061_s15 = smov 0  }
   0x6   :  { %s4063_s16 = smov 0   ;;  %s4065_s17 = smov 0  }
   0x7   :  { %s4067_s18 = smov 0   ;;  %s4069_s19 = smov 0  }
   0x8 LB: > { %4658 = sst [smem:[#allocation18_spill]] %s4018_s17  ;;  %s2402_s20 = sadd.s32 4294967295, %s4026_s19   ;;  %s4026_s19 = sphi %s4069_s19, %s17_s19   ;;  %s4022_s18 = sphi %s4067_s18, %s4681_s18   ;;  %s4018_s17 = sphi %s4065_s17, %s4680_s17   ;;  %s4014_s16 = sphi %s4063_s16, %s4686_s16   ;;  %s4010_s15 = sphi %s4061_s15, %s4685_s15   ;;  %s4006_s14 = sphi %s4059_s14, %s4684_s14   ;;  %s4002_s13 = sphi %s4057_s13, %s4683_s13   ;;  %s3998_s12 = sphi %s4055_s12, %s4682_s12  }
   0x9   : > { %4659 = sst [smem:[#allocation19_spill]] %s4022_s18  ;;  %s2403_s21 = sadd.s32 4294967294, %s4026_s19  }
   0xa   : > { %s26_s22 = sadd.s32 1, %s4018_s17  ;;  %s29_s23 = sadd.s32 1, %s4022_s18 }
   0xb   : > { %p27_p0 = scmp.ge.s32.totalorder %s26_s22, 2  ;;  %s80_s24 = sadd.s32 1, %s4006_s14 }
   0xc   : > { %p90_p1 = scmp.ne.s32.totalorder %s4006_s14, %s4002_s13  ;;  %p91_p2 = scmp.eq.s32.totalorder %s2402_s20, 3 }
   0xd   : > { %s4688_s22 = smov (%p27_p0, %s26_s22), 0  ;;  %s4690_s23 = smov (!%p27_p0, %s29_s23), %s4022_s18 }
   0xe   : > { %4660 = sst [smem:[#allocation20_spill]] %s4688_s22  ;;  %s76_s25 = ssub.s32 %s4018_s17, %s4688_s22 }
   0xf   : > { %p4107_p3 = por %p91_p2, %p90_p1  ;;  %p31_p4 = scmp.ge.s32.totalorder %s4690_s23, 2 }
  0x10   : > { %p96_p5 = scmp.ne.s32.totalorder %s4002_s13, %s3998_s12  ;;  %p97_p6 = scmp.eq.s32.totalorder %s2403_s21, 3 }
  0x11   : > { %s4661_s26 = scalar_select %p4107_p3, 1, 0 }
  0x12   : > { %p2404_p7 = scmp.ge.s32.totalorder %s4026_s19, 1  ;;  %s4692_s23 = smov (%p31_p4, %s4690_s23), 0 }
  0x13   : > { %4662 = sst [smem:[#allocation21_spill]] %s4692_s23  ;;  %p4116_p8 = por %p97_p6, %p96_p5 }
  0x14   : > { %p104_p9 = scmp.lt.s32.totalorder %s4026_s19, 5  ;;  %s75_s28 = ssub.s32 %s4022_s18, %s4692_s23 }
  0x15   : > { %s4663_s27 = scalar_select %p4116_p8, 1, 0 }
  0x16   : > { %s77_s29 = sor.u32 %s76_s25, %s75_s28  ;;  %p4123_p10 = pnand %p2404_p7, %p104_p9 }
  0x17   : > { %p78_p11 = scmp.eq.s32.totalorder %s77_s29, 0  ;;  %p4127_p12 = scmp.eq.s32.totalorder %s2402_s20, 0 }
  0x18   : > { %s4664_s30 = scalar_select %p4123_p10, 1, 0 }
  0x19   : > { %s4665_s4 = scalar_select %p4127_p12, 1, 0 }
  0x1a   : > { %p3758_p13 = pneg %p4123_p10  ;;  %s4028_s6 = smov [#allocation5]  }
  0x1b   : > { %s4134_s5 = scalar_select %p78_p11, %s4006_s14, %s80_s24  }
  0x1c   : > { %s116_s7 = sshll.u32 %s4028_s6, 4  ;;  %p4138_p0 = pnand %p4127_p12, %p3758_p13  ;;  %s117_s7 = int_to_ptr.vmem [resolvable:$true] %s116_s7 }
  0x1d   : > { %4666 = sst [smem:[#allocation22_spill]] %s4134_s5  ;;  %s4668_s1 = sld [smem:[#allocation23_spill]] }
  0x1e   : > { %p3843_p2 = pneg %p4138_p0 }
  0x23   : > { %s3841_s11 = scalar_lea.hbm %s4668_s1, 18432 }
  0x24   : > { %p3842_p1 = scmp.ne.s32.totalorder %s4668_s1, %s3841_s11  ;;  %p3848_p6 = scmp.lt.u32.totalorder %s3841_s11, %s4668_s1 }
  0x26   : > { %p3844_p4 = pnand %p3843_p2, %p3842_p1 }
  0x28   : > { %p3845_p5 = pneg %p3844_p4 }
  0x2a   : > { %p3850_p7 = pnand %p3848_p6, %p3845_p5 }
  0x2c   : > { %3853 = shalt.err (!%p3850_p7)
}
  0x2d   : > { %s3854_s28 = scalar_lea.vmem %s117_s7, 18432  ;;  %p3862_p8 = scmp.lt.s32.totalorder %s117_s7, %s117_s7 }
  0x2e   : > { %p3855_p9 = scmp.ne.s32.totalorder %s117_s7, %s3854_s28  ;;  %p3863_p3 = scmp.lt.s32.totalorder %s3854_s28, %s3854_s28 }
  0x30   : > { %p3857_p11 = pnand %p3855_p9, %p3843_p2  ;;  %p3864_p12 = por %p3863_p3, %p3862_p8 }
  0x32   : > { %p3858_p13 = pneg %p3857_p11 }
  0x34   : > { %p3865_p10 = pnand %p3864_p12, %p3858_p13 }
  0x36   : > { %3868 = shalt.err (!%p3865_p10)
}
  0x37   : > { %s4029_s29 = smov 128   ;;  %s4030_s6 = smov 8  }
  0x38   : > { %3761 = dma.hbm_to_vmem [thread:$0]  (!%p4138_p0), %s4668_s1, 18432, %s117_s7, [#allocation6], %s4029_s29, %s4029_s29, %s4030_s6  }
  0x39   : > { %p4669_p1 = scmp.ne.s32.totalorder %s4664_s30, 0 }
  0x3a   : > { %p4670_p4 = scmp.ne.s32.totalorder (!%p4669_p1), %s4665_s4, 0 }
  0x3b   : > { %135 = sbr.rel (%p4669_p1) target bundleno = 535 (0x217), region = 28 }
  0x42   : > { %3987 = dma.done.wait (%p4670_p4), [#allocation6], 18432  }
  0x43   : > { %3989 = vsyncadd (%p4670_p4), [#allocation6], 4294948864  ;;  %s4650_s8 = sand.u32 1, %s4002_s13   ;;  %p3768_p3 = scmp.eq.s32.totalorder %s4010_s15, 0 }
  0x44   : > { %s4167_s11 = sshll.u32 %s4650_s8, 7  ;;  %s2522_s30 = smul.u32 6912, %s4014_s16 }
  0x45   : > { %p153_p8 = scmp.lt.s32.totalorder %s4010_s15, 0  ;;  %s4031_s4 = smov [#allocation2]  }
  0x46   : > { %s171_s21 = scalar_lea.hbm %s4642_s0, %s2522_s30  ;;  %s179_s24 = sshll.u32 %s4031_s4, 4  ;;  %s4175_s24 = int_to_ptr.vmem [resolvable:$true] %s179_s24 }
  0x47   : > { %s154_s25 = ssub.s32 0, %s4010_s15  ;;  %s3869_s28 = scalar_lea.hbm %s171_s21, 3840 }
  0x48   : > { %p3870_p10 = scmp.ne.s32.totalorder %s171_s21, %s3869_s28  ;;  %s4652_s9 = scalar_lea.hbm %s4642_s0, 13824 }
  0x49   : > { %p3874_p2 = scmp.lt.u32.totalorder %s171_s21, %s4642_s0  ;;  %p3875_p5 = scmp.lt.u32.totalorder %s4652_s9, %s3869_s28 }
  0x4a   : > { %p3871_p12 = pnand %p3870_p10, %p3768_p3  ;;  %p3877_p7 = scmp.lt.u32.totalorder %s3869_s28, %s171_s21 }
  0x4b   : > { %p3876_p6 = por %p3875_p5, %p3874_p2 }
  0x4c   : > { %p3872_p0 = pneg %p3871_p12 }
  0x4d   : > { %p3878_p9 = por %p3877_p7, %p3876_p6 }
  0x4f   : > { %p3879_p11 = pnand %p3878_p9, %p3872_p0 }
  0x51   : > { %3882 = shalt.err (!%p3879_p11)  }
  0x52   : > { %s3883_s20 = scalar_lea.vmem %s4175_s24, 3840  ;;  %s4651_s8 = scalar_lea.vmem %s4175_s24, 7680 }
  0x53   : > { %p3884_p13 = scmp.ne.s32.totalorder %s4175_s24, %s3883_s20  ;;  %p3890_p10 = scmp.lt.s32.totalorder %s4175_s24, %s4175_s24 }
  0x54   : > { %p3891_p12 = scmp.lt.s32.totalorder %s4651_s8, %s3883_s20 }
  0x55   : > { %p3885_p1 = pnand %p3884_p13, %p3768_p3 }
  0x56   : > { %p3892_p2 = por %p3891_p12, %p3890_p10 }
  0x57   : > { %p3886_p4 = pneg %p3885_p1 }
  0x59   : > { %p3893_p5 = pnand %p3892_p2, %p3886_p4 }
  0x5b   : > { %3896 = shalt.err (!%p3893_p5)  }
  0x5c   : > { %3753 = dma.hbm_to_vmem [thread:$0]  (%p3768_p3), %s171_s21, 3840, %s4175_s24, [#allocation3] }
  0x5d   : > { %s2409_s4 = smin.u32 %s4010_s15, %s154_s25  ;;  %s183_s28 = sadd.s32 1, %s4010_s15 }
  0x5e   : > { %s156_s29 = sand.u32 1, %s2409_s4   ;;  %s2338_s10 = smul.u32 192, %s4010_s15 }
  0x5f   : > { %s157_s6 = ssub.s32 0, %s156_s29  ;;  %s2339_s30 = smul.u32 432, %s4014_s16 }
  0x60   : > { %s4694_s6 = smov (!%p153_p8, %s157_s6), %s156_s29  ;;  %p4210_p6 = scmp.lt.s32.totalorder %s183_s28, 2 }
  0x61   : > { %p2411_p0 = scmp.lt.s32.totalorder %s4694_s6, 0  ;;  %s163_s7 = sadd.s32 2, %s4694_s6 }
  0x62   : > { %s2340_s8 = sadd.s32 %s2339_s30, %s2338_s10  ;;  %s4672_s9 = scalar_lea.hbm %s4642_s0, 13824 }
  0x63   : > { %s4696_s7 = smov (!%p2411_p0, %s163_s7), %s4694_s6  ;;  %s2415_s25 = sshll.u32 %s2340_s8, 4 }
  0x64   : > { %s188_s21 = ssub.s32 1, %s4696_s7  ;;  %s2342_s1 = scalar_lea.hbm %s4642_s0, %s2415_s25 }
  0x65   : > { %s195_s29 = smul.u32 240, %s188_s21  ;;  %s2343_s23 = scalar_lea.hbm %s2342_s1, 3072 }
  0x66   : > { %s197_s6 = scalar_lea.sflag [#allocation3], %s188_s21  ;;  %s3925_s17 = scalar_lea.hbm %s2342_s1, 6912 }
  0x67   : > { %s196_s22 = scalar_lea.vmem [#allocation2], %s195_s29  ;;  %p3898_p3 = scmp.ne.s32.totalorder %s2343_s23, %s3925_s17 }
  0x68   : > { %s205_s18 = sshll.u32 %s196_s22, 4  ;;  %p3902_p9 = scmp.lt.u32.totalorder %s2343_s23, %s4642_s0  ;;  %s206_s18 = int_to_ptr.vmem [resolvable:$true] %s205_s18 }
  0x69   : > { %p3899_p8 = pnand %p3898_p3, %p4210_p6  ;;  %p3903_p11 = scmp.lt.u32.totalorder %s4672_s9, %s3925_s17 }
  0x6a   : > { %p3905_p1 = scmp.lt.u32.totalorder %s3925_s17, %s2343_s23 }
  0x6b   : > { %p3900_p7 = pneg %p3899_p8  ;;  %p3904_p13 = por %p3903_p11, %p3902_p9 }
  0x6d   : > { %p3906_p4 = por %p3905_p1, %p3904_p13 }
  0x6f   : > { %p3907_p10 = pnand %p3906_p4, %p3900_p7 }
  0x71   : > { %3910 = shalt.err (!%p3907_p10)  }
  0x72   : > { %s3911_s22 = scalar_lea.vmem %s206_s18, 3840  ;;  %p3918_p0 = scmp.lt.s32.totalorder %s206_s18, %s4175_s24 }
  0x73   : > { %p3912_p12 = scmp.ne.s32.totalorder %s206_s18, %s3911_s22  ;;  %s4673_s1 = scalar_lea.vmem %s4175_s24, 7680 }
  0x74   : > { %p3919_p3 = scmp.lt.s32.totalorder %s4673_s1, %s3911_s22 }
  0x75   : > { %p3913_p2 = pnand %p3912_p12, %p4210_p6 }
  0x76   : > { %p3920_p8 = por %p3919_p3, %p3918_p0 }
  0x77   : > { %p3914_p5 = pneg %p3913_p2 }
  0x79   : > { %p3921_p9 = pnand %p3920_p8, %p3914_p5 }
  0x7b   : > { %3924 = shalt.err (!%p3921_p9)  }
  0x7c   : > { %3755 = dma.hbm_to_vmem [thread:$0]  (%p4210_p6), %s2343_s23, 3840, %s206_s18, %s197_s6 }
  0x7d   : > { %s4235_s17 = scalar_lea.vmem [#allocation8], %s4167_s11  ;;  %s209_s5 = scalar_lea.sflag [#allocation3], %s4696_s7 }
  0x7e   : > { %3990 = dma.done.wait %s209_s5, 3840 }
  0x7f   : > { %3991 = vsyncadd %s209_s5, 4294963456  ;;  %v232_v0 = vld [vmem:[#allocation5] sm:$0xff]  ;;  %v233_v1 = vld [vmem:[#allocation5 + $0x8] sm:$0xff]  ;;  %s214_s18 = smul.u32 240, %s4696_s7  ;;  %s2523_s7 = sshll.u32 %s4010_s15, 4 }
  0x80   : > { %v1106_v2 = vld [vmem:[#allocation5 + $0x200] sm:$0xff]  ;;  %v3316_v3 = vpack.c.bf16 %v233_v1, %v232_v0  ;;  %v1107_v4 = vld [vmem:[#allocation5 + $0x208] sm:$0xff]  ;;  %v234_v5 = vld [vmem:[#allocation5 + $0x10] sm:$0xff]  ;;  %s2516_s30 = sshll.u32 %s4014_s16, 5  ;;  %s2293_s20 = sshll.u32 %s4235_s17, 4  ;;  %s4581_s20 = int_to_ptr.vmem [resolvable:$true] %s2293_s20 }
  0x81   : > { %v235_v6 = vld [vmem:[#allocation5 + $0x18] sm:$0xff]  ;;  %v3444_v7 = vpack.c.bf16 %v1107_v4, %v1106_v2  ;;  %v1108_v9 = vld [vmem:[#allocation5 + $0x210] sm:$0xff]  ;;  %v236_v11 = vld [vmem:[#allocation5 + $0x20] sm:$0xff]  ;;  %s4239_s23 = scalar_lea.vmem [#allocation2], %s214_s18  ;;  %s2290_s15 = sadd.s32 %s2523_s7, %s2516_s30 }
  0x82   : > { %v3320_v8 = vpack.c.bf16 %v235_v6, %v234_v5  ;;  %v1109_v10 = vld [vmem:[#allocation5 + $0x218] sm:$0xff]  ;;  %3317 = vmatprep.subr.bf16.mxu1 %v3316_v3  ;;  %v237_v13 = vld [vmem:[#allocation5 + $0x28] sm:$0xff]  ;;  %v1110_v14 = vld [vmem:[#allocation5 + $0x220] sm:$0xff]  ;;  %s2517_s16 = sshll.u32 %s2290_s15, 7  ;;  %s4674_s29 = sand.u32 1, %s4002_s13  }
  0x83   : > { %v3448_v12 = vpack.c.bf16 %v1109_v10, %v1108_v9  ;;  %v1111_v15 = vld [vmem:[#allocation5 + $0x228] sm:$0xff]  ;;  %3445 = vmatprep.subr.bf16.mxu0 %v3444_v7  ;;  %3319 = vmatpush3.bf16.msra.mxu1 %v3316_v3  ;;  %v3324_v16 = vpack.c.bf16 %v237_v13, %v236_v11  ;;  %v238_v18 = vld [vmem:[#allocation5 + $0x30] sm:$0xff]  ;;  %v239_v19 = vld [vmem:[#allocation5 + $0x38] sm:$0xff]  ;;  %s4579_s4 = scalar_lea.hbm %s4645_s3, %s2517_s16  ;;  %s4590_s6 = scalar_lea.sflag [#allocation7], %s4674_s29 }
  0x84   : > { %3447 = vmatpush3.bf16.msra.mxu0 %v3444_v7  ;;  %3321 = vmatprep.subr.bf16.mxu1 %v3320_v8  ;;  %v3452_v17 = vpack.c.bf16 %v1111_v15, %v1110_v14  ;;  %v1112_v20 = vld [vmem:[#allocation5 + $0x230] sm:$0xff]  ;;  %v1113_v21 = vld [vmem:[#allocation5 + $0x238] sm:$0xff]  ;;  %v3328_v22 = vpack.c.bf16 %v239_v19, %v238_v18  ;;  %v240_v24 = vld [vmem:[#allocation5 + $0x40] sm:$0xff]  ;;  %s3926_s28 = scalar_lea.vmem %s4581_s20, 2048  ;;  %p4675_p7 = scmp.ne.s32.totalorder %s4661_s26, 0 }
  0x85   : > { %3449 = vmatprep.subr.bf16.mxu0 %v3448_v12  ;;  %v3456_v23 = vpack.c.bf16 %v1113_v21, %v1112_v20  ;;  %v241_v25 = vld [vmem:[#allocation5 + $0x48] sm:$0xff]  ;;  %v216_v26 = vld [vmem:[%s4239_s23] sm:$0xff]  ;;  %v243_v33 = vld [vmem:[#allocation5 + $0x58] sm:$0xff]  ;;  %p3927_p6 = scmp.ne.s32.totalorder %s4581_s20, %s3926_s28  ;;  %s4032_s8 = smov [#allocation8]  }
  0x86   : > { %v1114_v27 = vld [vmem:[#allocation5 + $0x240] sm:$0xff]  ;;  %v1115_v28 = vld [vmem:[#allocation5 + $0x248] sm:$0xff]  ;;  %2844 = vmatprep.mubr.f32.mxu1 %v216_v26  ;;  %v3332_v30 = vpack.c.bf16 %v241_v25, %v240_v24  ;;  %v242_v32 = vld [vmem:[#allocation5 + $0x50] sm:$0xff]  ;;  %s3930_s10 = sshll.u32 %s4032_s8, 4  ;;  %s3931_s10 = int_to_ptr.vmem [resolvable:$false] %s3930_s10 }
  0x87   : > { %3323 = vmatpush3.bf16.msra.mxu1 %v3320_v8  ;;  %v4243_v29 = vld [vmem:[%s4239_s23 + $0x19] sm:$0xff]  ;;  %v3460_v31 = vpack.c.bf16 %v1115_v28, %v1114_v27  ;;  %v3336_v36 = vpack.c.bf16 %v243_v33, %v242_v32  ;;  %v217_v58 = vld [vmem:[%s4239_s23 + $0x8] sm:$0xff]  ;;  %v4254_v0 = vld [vmem:[%s4239_s23 + $0x31] sm:$0xff]  ;;  %p3928_p11 = pnand %p3927_p6, %p4675_p7  ;;  %s3932_s9 = scalar_lea.vmem %s3931_s10, 4096 }
  0x88   : > { %3451 = vmatpush3.bf16.msra.mxu0 %v3448_v12  ;;  %3325 = vmatprep.subr.bf16.mxu1 %v3324_v16  ;;  %v1116_v34 = vld [vmem:[#allocation5 + $0x250] sm:$0xff]  ;;  %v1117_v35 = vld [vmem:[#allocation5 + $0x258] sm:$0xff]  ;;  %v244_v38 = vld [vmem:[#allocation5 + $0x60] sm:$0xff]  ;;  %p3933_p1 = scmp.lt.s32.totalorder %s4581_s20, %s3931_s10  ;;  %p3934_p4 = scmp.lt.s32.totalorder %s3932_s9, %s3926_s28 }
  0x89   : > { %3453 = vmatprep.subr.bf16.mxu0 %v3452_v17  ;;  %3068 = vmatprep.mubr.f32.mxu0 %v4243_v29  ;;  %v3464_v37 = vpack.c.bf16 %v1117_v35, %v1116_v34  ;;  %v245_v39 = vld [vmem:[#allocation5 + $0x68] sm:$0xff]  ;;  %v1118_v40 = vld [vmem:[#allocation5 + $0x260] sm:$0xff]  ;;  %v246_v44 = vld [vmem:[#allocation5 + $0x70] sm:$0xff]  ;;  %p3929_p13 = pneg %p3928_p11 }
  0x8a   : > { %v1119_v41 = vld [vmem:[#allocation5 + $0x268] sm:$0xff]  ;;  %v3340_v42 = vpack.c.bf16 %v245_v39, %v244_v38  ;;  %v247_v45 = vld [vmem:[#allocation5 + $0x78] sm:$0xff]  ;;  %v1120_v46 = vld [vmem:[#allocation5 + $0x270] sm:$0xff]  ;;  %p3935_p10 = por %p3934_p4, %p3933_p1 }
  0x8b   : > { %3327 = vmatpush3.bf16.msra.mxu1 %v3324_v16  ;;  %v3468_v43 = vpack.c.bf16 %v1119_v41, %v1118_v40  ;;  %v1121_v47 = vld [vmem:[#allocation5 + $0x278] sm:$0xff]  ;;  %v3344_v48 = vpack.c.bf16 %v247_v45, %v246_v44  ;;  %v426_v50 = vld [vmem:[#allocation5 + $0x80] sm:$0xff]  ;;  %v427_v51 = vld [vmem:[#allocation5 + $0x88] sm:$0xff] }
  0x8c   : > { %3455 = vmatpush3.bf16.msra.mxu0 %v3452_v17  ;;  %3329 = vmatprep.subr.bf16.mxu1 %v3328_v22  ;;  %v3472_v49 = vpack.c.bf16 %v1121_v47, %v1120_v46  ;;  %v1332_v52 = vld [vmem:[#allocation5 + $0x280] sm:$0xff]  ;;  %v1333_v53 = vld [vmem:[#allocation5 + $0x288] sm:$0xff]  ;;  %v3348_v54 = vpack.c.bf16 %v427_v51, %v426_v50  ;;  %v428_v56 = vld [vmem:[#allocation5 + $0x90] sm:$0xff]  ;;  %p3936_p12 = pnand %p3935_p10, %p3929_p13 }
  0x8d   : > { %3457 = vmatprep.subr.bf16.mxu0 %v3456_v23  ;;  %v3476_v55 = vpack.c.bf16 %v1333_v53, %v1332_v52  ;;  %v429_v57 = vld [vmem:[#allocation5 + $0x98] sm:$0xff]  ;;  %v1334_v59 = vld [vmem:[#allocation5 + $0x290] sm:$0xff]  ;;  %v430_v2 = vld [vmem:[#allocation5 + $0xa0] sm:$0xff] }
  0x8e   : > { %v1335_v60 = vld [vmem:[#allocation5 + $0x298] sm:$0xff]  ;;  %v3352_v63 = vpack.c.bf16 %v429_v57, %v428_v56  ;;  %v431_v3 = vld [vmem:[#allocation5 + $0xa8] sm:$0xff]  ;;  %v4258_v4 = vld [vmem:[%s4239_s23 + $0x20] sm:$0xff] }
  0x8f   : > { %3331 = vmatpush3.bf16.msra.mxu1 %v3328_v22  ;;  %v4248_v61 = vld [vmem:[%s4239_s23 + $0x21] sm:$0xff]  ;;  %v4251_v62 = vld [vmem:[%s4239_s23 + $0x18] sm:$0xff]  ;;  %v3480_v1 = vpack.c.bf16 %v1335_v60, %v1334_v59  ;;  %v4266_v8 = vld [vmem:[%s4239_s23 + $0x30] sm:$0xff]  ;;  %v3356_v9 = vpack.c.bf16 %v431_v3, %v430_v2 }
  0x90   : > { %3459 = vmatpush3.bf16.msra.mxu0 %v3456_v23  ;;  %3333 = vmatprep.subr.bf16.mxu1 %v3332_v30  ;;  %v1336_v5 = vld [vmem:[#allocation5 + $0x2a0] sm:$0xff]  ;;  %v1337_v6 = vld [vmem:[#allocation5 + $0x2a8] sm:$0xff]  ;;  %v432_v12 = vld [vmem:[#allocation5 + $0xb0] sm:$0xff] }
  0x91   : > { %3461 = vmatprep.subr.bf16.mxu0 %v3460_v31  ;;  %v4262_v7 = vld [vmem:[%s4239_s23 + $0x39] sm:$0xff]  ;;  %v4270_v10 = vld [vmem:[%s4239_s23 + $0x49] sm:$0xff]  ;;  %v3484_v11 = vpack.c.bf16 %v1337_v6, %v1336_v5  ;;  %v4278_v17 = vld [vmem:[%s4239_s23 + $0x51] sm:$0xff] }
  0x92   : > { %v433_v13 = vld [vmem:[#allocation5 + $0xb8] sm:$0xff]  ;;  %v1338_v15 = vld [vmem:[#allocation5 + $0x2b0] sm:$0xff]  ;;  %v434_v22 = vld [vmem:[#allocation5 + $0xc0] sm:$0xff] }
  0x93   : > { %3335 = vmatpush3.bf16.msra.mxu1 %v3332_v30  ;;  %v4274_v14 = vld [vmem:[%s4239_s23 + $0x38] sm:$0xff]  ;;  %v4282_v18 = vld [vmem:[%s4239_s23 + $0x48] sm:$0xff]  ;;  %v3360_v19 = vpack.c.bf16 %v433_v13, %v432_v12  ;;  %v4290_v24 = vld [vmem:[%s4239_s23 + $0x50] sm:$0xff] }
  0x94   : > { %3463 = vmatpush3.bf16.msra.mxu0 %v3460_v31  ;;  %3337 = vmatprep.subr.bf16.mxu1 %v3336_v36  ;;  %v1339_v16 = vld [vmem:[#allocation5 + $0x2b8] sm:$0xff]  ;;  %v435_v23 = vld [vmem:[#allocation5 + $0xc8] sm:$0xff]  ;;  %v1340_v25 = vld [vmem:[#allocation5 + $0x2c0] sm:$0xff] }
  0x95   : > { %3465 = vmatprep.subr.bf16.mxu0 %v3464_v37  ;;  %v4286_v20 = vld [vmem:[%s4239_s23 + $0x61] sm:$0xff]  ;;  %v3488_v21 = vpack.c.bf16 %v1339_v16, %v1338_v15  ;;  %v4294_v27 = vld [vmem:[%s4239_s23 + $0x69] sm:$0xff]  ;;  %v3364_v30 = vpack.c.bf16 %v435_v23, %v434_v22  ;;  %v4302_v31 = vld [vmem:[%s4239_s23 + $0x79] sm:$0xff] }
  0x96   : > { %v1341_v26 = vld [vmem:[#allocation5 + $0x2c8] sm:$0xff]  ;;  %v4298_v28 = vld [vmem:[%s4239_s23 + $0x60] sm:$0xff]  ;;  %v437_v34 = vld [vmem:[#allocation5 + $0xd8] sm:$0xff] }
  0x97   : > { %3339 = vmatpush3.bf16.msra.mxu1 %v3336_v36  ;;  %v3492_v32 = vpack.c.bf16 %v1341_v26, %v1340_v25  ;;  %v436_v33 = vld [vmem:[#allocation5 + $0xd0] sm:$0xff]  ;;  %v4306_v35 = vld [vmem:[%s4239_s23 + $0x68] sm:$0xff]  ;;  %v4314_v39 = vld [vmem:[%s4239_s23 + $0x78] sm:$0xff] }
  0x98   : > { %3467 = vmatpush3.bf16.msra.mxu0 %v3464_v37  ;;  %3341 = vmatprep.subr.bf16.mxu1 %v3340_v42  ;;  %v1342_v36 = vld [vmem:[#allocation5 + $0x2d0] sm:$0xff]  ;;  %v1343_v37 = vld [vmem:[#allocation5 + $0x2d8] sm:$0xff]  ;;  %v3368_v40 = vpack.c.bf16 %v437_v34, %v436_v33  ;;  %v439_v44 = vld [vmem:[#allocation5 + $0xe8] sm:$0xff] }
  0x99   : > { %3469 = vmatprep.subr.bf16.mxu0 %v3468_v43  ;;  %v4310_v38 = vld [vmem:[%s4239_s23 + $0x81] sm:$0xff]  ;;  %v4318_v41 = vld [vmem:[%s4239_s23 + $0x91] sm:$0xff]  ;;  %v4334_v51 = vld [vmem:[%s4239_s23 + $0xa9] sm:$0xff] }
  0x9a   : > { %v4322_v45 = vld [vmem:[%s4239_s23 + $0x80] sm:$0xff]  ;;  %v1345_v47 = vld [vmem:[#allocation5 + $0x2e8] sm:$0xff]  ;;  %v1347_v57 = vld [vmem:[#allocation5 + $0x2f8] sm:$0xff] }
  0x9b   : > { %3343 = vmatpush3.bf16.msra.mxu1 %v3340_v42  ;;  %v3496_v42 = vpack.c.bf16 %v1343_v37, %v1342_v36  ;;  %v1344_v46 = vld [vmem:[#allocation5 + $0x2e0] sm:$0xff]  ;;  %v440_v53 = vld [vmem:[#allocation5 + $0xf0] sm:$0xff]  ;;  %v4346_v59 = vld [vmem:[%s4239_s23 + $0xa8] sm:$0xff] }
  0x9c   : > { %3471 = vmatpush3.bf16.msra.mxu0 %v3468_v43  ;;  %3345 = vmatprep.subr.bf16.mxu1 %v3344_v48  ;;  %v438_v43 = vld [vmem:[#allocation5 + $0xe0] sm:$0xff]  ;;  %v3500_v52 = vpack.c.bf16 %v1345_v47, %v1344_v46  ;;  %v1346_v56 = vld [vmem:[#allocation5 + $0x2f0] sm:$0xff]  ;;  %v653_v3 = vld [vmem:[#allocation5 + $0x108] sm:$0xff] }
  0x9d   : > { %3473 = vmatprep.subr.bf16.mxu0 %v3472_v49  ;;  %v3372_v50 = vpack.c.bf16 %v439_v44, %v438_v43  ;;  %v652_v2 = vld [vmem:[#allocation5 + $0x100] sm:$0xff]  ;;  %v1562_v23 = vld [vmem:[#allocation5 + $0x310] sm:$0xff]  ;;  %v1563_v25 = vld [vmem:[#allocation5 + $0x318] sm:$0xff] }
  0x9e   : > { %v4354_v5 = vld [vmem:[%s4239_s23 + $0xb0] sm:$0xff]  ;;  %v409_v12 = vld [vmem:[%s4239_s23 + $0x1] sm:$0xff]  ;;  %v3380_v13 = vpack.c.bf16 %v653_v3, %v652_v2  ;;  %v3512_v33 = vpack.c.bf16 %v1563_v25, %v1562_v23 }
  0x9f   : > { %3347 = vmatpush3.bf16.msra.mxu1 %v3344_v48  ;;  %v4326_v48 = vld [vmem:[%s4239_s23 + $0x99] sm:$0xff]  ;;  %v410_v22 = vld [vmem:[%s4239_s23 + $0x9] sm:$0xff] }
  0xa0   : > { %3475 = vmatpush3.bf16.msra.mxu0 %v3472_v49  ;;  %3349 = vmatprep.subr.bf16.mxu1 %v3348_v54  ;;  %v4330_v49 = vld [vmem:[%s4239_s23 + $0x90] sm:$0xff]  ;;  %v4364_v15 = vld [vmem:[%s4239_s23 + $0x1a] sm:$0xff]  ;;  %v4369_v26 = vld [vmem:[%s4239_s23 + $0x22] sm:$0xff] }
  0xa1   : > { %3477 = vmatprep.subr.bf16.mxu0 %v3476_v55  ;;  %v1560_v6 = vld [vmem:[#allocation5 + $0x300] sm:$0xff]  ;;  %v657_v36 = vld [vmem:[#allocation5 + $0x128] sm:$0xff]  ;;  %v658_v47 = vld [vmem:[#allocation5 + $0x130] sm:$0xff] }
  0xa2   : > { %2845 = vmatmul.mubr.f32.vlgmr.msra.gmra.mrb[0].mxu1 %v217_v58  ;;  %v4342_v58 = vld [vmem:[%s4239_s23 + $0xb1] sm:$0xff] }
  0xa3   : > { %3069 = vmatmul.mubr.f32.vlgmr.msra.gmra.mrb[0].mxu0 %v4248_v61  ;;  %3351 = vmatpush3.bf16.msra.mxu1 %v3348_v54  ;;  %v441_v54 = vld [vmem:[#allocation5 + $0xf8] sm:$0xff]  ;;  %v656_v34 = vld [vmem:[#allocation5 + $0x120] sm:$0xff]  ;;  %v1569_v2 = vld [vmem:[#allocation5 + $0x348] sm:$0xff] }
  0xa4   : > { %3479 = vmatpush3.bf16.msra.mxu0 %v3476_v55  ;;  %2847 = vmatprep.mubr.f32.mxu1 %v4251_v62  ;;  %v4338_v55 = vld [vmem:[%s4239_s23 + $0x98] sm:$0xff]  ;;  %v3376_v60 = vpack.c.bf16 %v441_v54, %v440_v53  ;;  %v1564_v37 = vld [vmem:[#allocation5 + $0x320] sm:$0xff]  ;;  %v3388_v43 = vpack.c.bf16 %v657_v36, %v656_v34 }
  0xa5   : > { %3071 = vmatprep.mubr.f32.mxu0 %v4254_v0  ;;  %3353 = vmatprep.subr.bf16.mxu1 %v3352_v63  ;;  %v4383_v44 = vld [vmem:[%s4239_s23 + $0x4a] sm:$0xff]  ;;  %v4388_v53 = vld [vmem:[%s4239_s23 + $0x52] sm:$0xff]  ;;  %v4393_v54 = vld [vmem:[%s4239_s23 + $0x62] sm:$0xff] }
  0xa6   : > { %2848 = vmatmul.mubr.f32.gmra.mrb[2].mxu1 %v4258_v4  ;;  %3481 = vmatprep.subr.bf16.mxu0 %v3480_v1  ;;  %v4398_v3 = vld [vmem:[%s4239_s23 + $0x6a] sm:$0xff]  ;;  %v4413_v25 = vld [vmem:[%s4239_s23 + $0x92] sm:$0xff] }
  0xa7   : > { %3072 = vmatmul.mubr.f32.gmra.mrb[2].mxu0 %v4262_v7  ;;  %3355 = vmatpush3.bf16.msra.mxu1 %v3352_v63  ;;  %v4350_v63 = vld [vmem:[%s4239_s23 + $0xc1] sm:$0xff] }
  0xa8   : > { %3483 = vmatpush3.bf16.msra.mxu0 %v3480_v1  ;;  %2850 = vmatprep.mubr.f32.mxu1 %v4266_v8  ;;  %v3504_v1 = vpack.c.bf16 %v1347_v57, %v1346_v56  ;;  %v660_v57 = vld [vmem:[#allocation5 + $0x140] sm:$0xff]  ;;  %v665_v34 = vld [vmem:[#allocation5 + $0x168] sm:$0xff] }
  0xa9   : > { %3074 = vmatprep.mubr.f32.mxu0 %v4270_v10  ;;  %3357 = vmatprep.subr.bf16.mxu1 %v3356_v9  ;;  %v1572_v36 = vld [vmem:[#allocation5 + $0x360] sm:$0xff] }
  0xaa   : > { %2851 = vmatmul.mubr.f32.gmra.mrb[4].mxu1 %v4274_v14  ;;  %3485 = vmatprep.subr.bf16.mxu0 %v3484_v11 }
  0xab   : > { %3075 = vmatmul.mubr.f32.gmra.mrb[4].mxu0 %v4278_v17  ;;  %3359 = vmatpush3.bf16.msra.mxu1 %v3356_v9  ;;  %v1561_v9 = vld [vmem:[#allocation5 + $0x308] sm:$0xff] }
  0xac   : > { %3487 = vmatpush3.bf16.msra.mxu0 %v3484_v11  ;;  %2853 = vmatprep.mubr.f32.mxu1 %v4282_v18  ;;  %v4358_v11 = vld [vmem:[%s4239_s23 + $0xc9] sm:$0xff]  ;;  %v3508_v16 = vpack.c.bf16 %v1561_v9, %v1560_v6  ;;  %v4403_v9 = vld [vmem:[%s4239_s23 + $0x7a] sm:$0xff] }
  0xad   : > { %3077 = vmatprep.mubr.f32.mxu0 %v4286_v20  ;;  %3361 = vmatprep.subr.bf16.mxu1 %v3360_v19 }
  0xae   : > { %2854 = vmatmul.mubr.f32.gmra.mrb[6].mxu1 %v4290_v24  ;;  %3489 = vmatprep.subr.bf16.mxu0 %v3488_v21 }
  0xaf   : > { %3078 = vmatmul.mubr.f32.gmra.mrb[6].mxu0 %v4294_v27  ;;  %3363 = vmatpush3.bf16.msra.mxu1 %v3360_v19  ;;  %v654_v19 = vld [vmem:[#allocation5 + $0x110] sm:$0xff] }
  0xb0   : > { %3491 = vmatpush3.bf16.msra.mxu0 %v3488_v21  ;;  %2856 = vmatprep.mubr.f32.mxu1 %v4298_v28  ;;  %v655_v21 = vld [vmem:[#allocation5 + $0x118] sm:$0xff] }
  0xb1   : > { %3080 = vmatprep.mubr.f32.mxu0 %v4302_v31  ;;  %3365 = vmatprep.subr.bf16.mxu1 %v3364_v30 }
  0xb2   : > { %2857 = vmatmul.mubr.f32.gmra.mrb[8].mxu1 %v4306_v35  ;;  %3493 = vmatprep.subr.bf16.mxu0 %v3492_v32 }
  0xb3   : > { %3081 = vmatmul.mubr.f32.gmra.mrb[8].mxu0 %v4310_v38  ;;  %3367 = vmatpush3.bf16.msra.mxu1 %v3364_v30  ;;  %v3384_v30 = vpack.c.bf16 %v655_v21, %v654_v19  ;;  %v1570_v19 = vld [vmem:[#allocation5 + $0x350] sm:$0xff]  ;;  %v1571_v21 = vld [vmem:[#allocation5 + $0x358] sm:$0xff] }
  0xb4   : > { %3495 = vmatpush3.bf16.msra.mxu0 %v3492_v32  ;;  %2859 = vmatprep.mubr.f32.mxu1 %v4314_v39  ;;  %v4373_v32 = vld [vmem:[%s4239_s23 + $0x32] sm:$0xff] }
  0xb5   : > { %3083 = vmatprep.mubr.f32.mxu0 %v4318_v41  ;;  %3369 = vmatprep.subr.bf16.mxu1 %v3368_v40 }
  0xb6   : > { %2860 = vmatmul.mubr.f32.gmra.mrb[10].mxu1 %v4322_v45  ;;  %3497 = vmatprep.subr.bf16.mxu0 %v3496_v42 }
  0xb7   : > { %3084 = vmatmul.mubr.f32.gmra.mrb[10].mxu0 %v4326_v48  ;;  %3371 = vmatpush3.bf16.msra.mxu1 %v3368_v40  ;;  %v1565_v40 = vld [vmem:[#allocation5 + $0x328] sm:$0xff] }
  0xb8   : > { %3499 = vmatpush3.bf16.msra.mxu0 %v3496_v42  ;;  %2862 = vmatprep.mubr.f32.mxu1 %v4330_v49  ;;  %v4378_v42 = vld [vmem:[%s4239_s23 + $0x3a] sm:$0xff]  ;;  %v3516_v46 = vpack.c.bf16 %v1565_v40, %v1564_v37 }
  0xb9   : > { %3086 = vmatprep.mubr.f32.mxu0 %v4334_v51  ;;  %3373 = vmatprep.subr.bf16.mxu1 %v3372_v50  ;;  %v1573_v37 = vld [vmem:[#allocation5 + $0x368] sm:$0xff] }
  0xba   : > { %2863 = vmatmul.mubr.f32.gmra.mrb[12].mxu1 %v4338_v55  ;;  %3501 = vmatprep.subr.bf16.mxu0 %v3500_v52  ;;  %v4418_v40 = vld [vmem:[%s4239_s23 + $0x9a] sm:$0xff] }
  0xbb   : > { %3087 = vmatmul.mubr.f32.gmra.mrb[12].mxu0 %v4342_v58  ;;  %3375 = vmatpush3.bf16.msra.mxu1 %v3372_v50  ;;  %v659_v50 = vld [vmem:[#allocation5 + $0x138] sm:$0xff] }
  0xbc   : > { %3503 = vmatpush3.bf16.msra.mxu0 %v3500_v52  ;;  %2865 = vmatprep.mubr.f32.mxu1 %v4346_v59  ;;  %v1567_v52 = vld [vmem:[#allocation5 + $0x338] sm:$0xff] }
  0xbd   : > { %3089 = vmatprep.mubr.f32.mxu0 %v4350_v63  ;;  %3377 = vmatprep.subr.bf16.mxu1 %v3376_v60 }
  0xbe   : > { %2866 = vmatmul.mubr.f32.gmra.mrb[14].mxu1 %v4354_v5  ;;  %3505 = vmatprep.subr.bf16.mxu0 %v3504_v1 }
  0xbf   : > { %3090 = vmatmul.mubr.f32.gmra.mrb[14].mxu0 %v4358_v11  ;;  %3379 = vmatpush3.bf16.msra.mxu1 %v3376_v60  ;;  %v661_v60 = vld [vmem:[#allocation5 + $0x148] sm:$0xff] }
  0xc0   : > { %3507 = vmatpush3.bf16.msra.mxu0 %v3504_v1  ;;  %2900 = vmatprep.mubr.f32.mxu1 %v409_v12  ;;  %v1568_v1 = vld [vmem:[#allocation5 + $0x340] sm:$0xff]  ;;  %v3396_v6 = vpack.c.bf16 %v661_v60, %v660_v57 }
  0xc1   : > { %3124 = vmatprep.mubr.f32.mxu0 %v4364_v15  ;;  %3381 = vmatprep.subr.bf16.mxu1 %v3380_v13  ;;  %v3524_v12 = vpack.c.bf16 %v1569_v2, %v1568_v1  ;;  %v4433_v60 = vld [vmem:[%s4239_s23 + $0xc2] sm:$0xff] }
  0xc2   : > { %2901 = vmatmul.mubr.f32.vlgmr.msra.gmra.mrb[0].mxu1 %v410_v22  ;;  %3509 = vmatprep.subr.bf16.mxu0 %v3508_v16  ;;  %v4408_v22 = vld [vmem:[%s4239_s23 + $0x82] sm:$0xff] }
  0xc3   : > { %3125 = vmatmul.mubr.f32.vlgmr.msra.gmra.mrb[0].mxu0 %v4369_v26  ;;  %3383 = vmatpush3.bf16.msra.mxu1 %v3380_v13  ;;  %v662_v13 = vld [vmem:[#allocation5 + $0x150] sm:$0xff]  ;;  %v880_v2 = vld [vmem:[#allocation5 + $0x180] sm:$0xff] }
  0xc4   : > { %3511 = vmatpush3.bf16.msra.mxu0 %v3508_v16  ;;  %2903 = vmatprep.mubr.f32.mxu1 %v4243_v29  ;;  %v1566_v29 = vld [vmem:[#allocation5 + $0x330] sm:$0xff]  ;;  %v663_v16 = vld [vmem:[#allocation5 + $0x158] sm:$0xff] }
  0xc5   : > { %3127 = vmatprep.mubr.f32.mxu0 %v4373_v32  ;;  %3385 = vmatprep.subr.bf16.mxu1 %v3384_v30  ;;  %v3520_v56 = vpack.c.bf16 %v1567_v52, %v1566_v29  ;;  %v3400_v23 = vpack.c.bf16 %v663_v16, %v662_v13  ;;  %v667_v29 = vld [vmem:[#allocation5 + $0x178] sm:$0xff]  ;;  %v1574_v52 = vld [vmem:[#allocation5 + $0x370] sm:$0xff]  ;;  %v1787_v13 = vld [vmem:[#allocation5 + $0x388] sm:$0xff] }
  0xc6   : > { %2904 = vmatmul.mubr.f32.gmra.mrb[2].mxu1 %v4248_v61  ;;  %3513 = vmatprep.subr.bf16.mxu0 %v3512_v33  ;;  %v3392_v61 = vpack.c.bf16 %v659_v50, %v658_v47  ;;  %v3532_v47 = vpack.c.bf16 %v1573_v37, %v1572_v36  ;;  %v666_v50 = vld [vmem:[#allocation5 + $0x170] sm:$0xff]  ;;  %v1789_v37 = vld [vmem:[#allocation5 + $0x398] sm:$0xff] }
  0xc7   : > { %3128 = vmatmul.mubr.f32.gmra.mrb[2].mxu0 %v4378_v42  ;;  %3387 = vmatpush3.bf16.msra.mxu1 %v3384_v30  ;;  %v3528_v30 = vpack.c.bf16 %v1571_v21, %v1570_v19  ;;  %v3408_v57 = vpack.c.bf16 %v667_v29, %v666_v50  ;;  %v4438_v16 = vld [vmem:[%s4239_s23 + $0xca] sm:$0xff]  ;;  %v635_v19 = vld [vmem:[%s4239_s23 + $0x2] sm:$0xff] }
  0xc8   : > { %3515 = vmatpush3.bf16.msra.mxu0 %v3512_v33  ;;  %2906 = vmatprep.mubr.f32.mxu1 %v4254_v0  ;;  %v664_v33 = vld [vmem:[#allocation5 + $0x160] sm:$0xff]  ;;  %v1788_v36 = vld [vmem:[#allocation5 + $0x390] sm:$0xff]  ;;  %v885_v29 = vld [vmem:[#allocation5 + $0x1a8] sm:$0xff] }
  0xc9   : > { %3130 = vmatprep.mubr.f32.mxu0 %v4383_v44  ;;  %3389 = vmatprep.subr.bf16.mxu1 %v3388_v43  ;;  %v884_v50 = vld [vmem:[#allocation5 + $0x1a0] sm:$0xff] }
  0xca   : > { %2907 = vmatmul.mubr.f32.gmra.mrb[4].mxu1 %v4262_v7  ;;  %3517 = vmatprep.subr.bf16.mxu0 %v3516_v46 }
  0xcb   : > { %3131 = vmatmul.mubr.f32.gmra.mrb[4].mxu0 %v4388_v53  ;;  %3391 = vmatpush3.bf16.msra.mxu1 %v3388_v43  ;;  %v3404_v43 = vpack.c.bf16 %v665_v34, %v664_v33  ;;  %v883_v33 = vld [vmem:[#allocation5 + $0x198] sm:$0xff] }
  0xcc   : > { %3519 = vmatpush3.bf16.msra.mxu0 %v3516_v46  ;;  %2909 = vmatprep.mubr.f32.mxu1 %v4270_v10  ;;  %v4423_v46 = vld [vmem:[%s4239_s23 + $0xaa] sm:$0xff] }
  0xcd   : > { %3133 = vmatprep.mubr.f32.mxu0 %v4393_v54  ;;  %3393 = vmatprep.subr.bf16.mxu1 %v3392_v61  ;;  %v636_v34 = vld [vmem:[%s4239_s23 + $0xa] sm:$0xff] }
  0xce   : > { %2910 = vmatmul.mubr.f32.gmra.mrb[6].mxu1 %v4278_v17  ;;  %3521 = vmatprep.subr.bf16.mxu0 %v3520_v56 }
  0xcf   : > { %3134 = vmatmul.mubr.f32.gmra.mrb[6].mxu0 %v4398_v3  ;;  %3395 = vmatpush3.bf16.msra.mxu1 %v3392_v61  ;;  %v1575_v61 = vld [vmem:[#allocation5 + $0x378] sm:$0xff] }
  0xd0   : > { %3523 = vmatpush3.bf16.msra.mxu0 %v3520_v56  ;;  %2912 = vmatprep.mubr.f32.mxu1 %v4286_v20  ;;  %v4428_v56 = vld [vmem:[%s4239_s23 + $0xb2] sm:$0xff]  ;;  %v3536_v1 = vpack.c.bf16 %v1575_v61, %v1574_v52 }
  0xd1   : > { %3136 = vmatprep.mubr.f32.mxu0 %v4403_v9  ;;  %3397 = vmatprep.subr.bf16.mxu1 %v3396_v6  ;;  %v1790_v52 = vld [vmem:[#allocation5 + $0x3a0] sm:$0xff]  ;;  %v1791_v61 = vld [vmem:[#allocation5 + $0x3a8] sm:$0xff] }
  0xd2   : > { %2913 = vmatmul.mubr.f32.gmra.mrb[8].mxu1 %v4294_v27  ;;  %3525 = vmatprep.subr.bf16.mxu0 %v3524_v12 }
  0xd3   : > { %3137 = vmatmul.mubr.f32.gmra.mrb[8].mxu0 %v4408_v22  ;;  %3399 = vmatpush3.bf16.msra.mxu1 %v3396_v6  ;;  %v881_v6 = vld [vmem:[#allocation5 + $0x188] sm:$0xff] }
  0xd4   : > { %3527 = vmatpush3.bf16.msra.mxu0 %v3524_v12  ;;  %2915 = vmatprep.mubr.f32.mxu1 %v4302_v31  ;;  %v1786_v12 = vld [vmem:[#allocation5 + $0x380] sm:$0xff]  ;;  %v3412_v21 = vpack.c.bf16 %v881_v6, %v880_v2  ;;  %v886_v2 = vld [vmem:[#allocation5 + $0x1b0] sm:$0xff]  ;;  %v887_v6 = vld [vmem:[#allocation5 + $0x1b8] sm:$0xff] }
  0xd5   : > { %3139 = vmatprep.mubr.f32.mxu0 %v4413_v25  ;;  %3401 = vmatprep.subr.bf16.mxu1 %v3400_v23 }
  0xd6   : > { %2916 = vmatmul.mubr.f32.gmra.mrb[10].mxu1 %v4310_v38  ;;  %3529 = vmatprep.subr.bf16.mxu0 %v3528_v30 }
  0xd7   : > { %3140 = vmatmul.mubr.f32.gmra.mrb[10].mxu0 %v4418_v40  ;;  %3403 = vmatpush3.bf16.msra.mxu1 %v3400_v23  ;;  %v3540_v23 = vpack.c.bf16 %v1787_v13, %v1786_v12  ;;  %v1792_v12 = vld [vmem:[#allocation5 + $0x3b0] sm:$0xff]  ;;  %v1793_v13 = vld [vmem:[#allocation5 + $0x3b8] sm:$0xff] }
  0xd8   : > { %3531 = vmatpush3.bf16.msra.mxu0 %v3528_v30  ;;  %2918 = vmatprep.mubr.f32.mxu1 %v4318_v41  ;;  %v882_v30 = vld [vmem:[#allocation5 + $0x190] sm:$0xff] }
  0xd9   : > { %3142 = vmatprep.mubr.f32.mxu0 %v4423_v46  ;;  %3405 = vmatprep.subr.bf16.mxu1 %v3404_v43 }
  0xda   : > { %2919 = vmatmul.mubr.f32.gmra.mrb[12].mxu1 %v4326_v48  ;;  %3533 = vmatprep.subr.bf16.mxu0 %v3532_v47 }
  0xdb   : > { %3143 = vmatmul.mubr.f32.gmra.mrb[12].mxu0 %v4428_v56  ;;  %3407 = vmatpush3.bf16.msra.mxu1 %v3404_v43  ;;  %v3416_v43 = vpack.c.bf16 %v883_v33, %v882_v30  ;;  %v1795_v30 = vld [vmem:[#allocation5 + $0x3c8] sm:$0xff] }
  0xdc   : > { %3535 = vmatpush3.bf16.msra.mxu0 %v3532_v47  ;;  %2921 = vmatprep.mubr.f32.mxu1 %v4334_v51  ;;  %v3544_v47 = vpack.c.bf16 %v1789_v37, %v1788_v36  ;;  %v890_v36 = vld [vmem:[#allocation5 + $0x1d0] sm:$0xff]  ;;  %v891_v37 = vld [vmem:[#allocation5 + $0x1d8] sm:$0xff] }
  0xdd   : > { %3145 = vmatprep.mubr.f32.mxu0 %v4433_v60  ;;  %3409 = vmatprep.subr.bf16.mxu1 %v3408_v57 }
  0xde   : > { %2922 = vmatmul.mubr.f32.gmra.mrb[14].mxu1 %v4342_v58  ;;  %3537 = vmatprep.subr.bf16.mxu0 %v3536_v1 }
  0xdf   : > { %3146 = vmatmul.mubr.f32.gmra.mrb[14].mxu0 %v4438_v16  ;;  %3411 = vmatpush3.bf16.msra.mxu1 %v3408_v57  ;;  %v3420_v57 = vpack.c.bf16 %v885_v29, %v884_v50  ;;  %v3432_v50 = vpack.c.bf16 %v891_v37, %v890_v36  ;;  %v2013_v36 = vld [vmem:[#allocation5 + $0x408] sm:$0xff]  ;;  %v2479_v37 = vld [vmem:[%s4239_s23 + $0xe0] sm:$0xff] }
  0xe0   : > { %3539 = vmatpush3.bf16.msra.mxu0 %v3536_v1  ;;  %2956 = vmatprep.mubr.f32.mxu1 %v635_v19  ;;  %v3548_v1 = vpack.c.bf16 %v1791_v61, %v1790_v52  ;;  %v888_v19 = vld [vmem:[#allocation5 + $0x1c0] sm:$0xff]  ;;  %v893_v61 = vld [vmem:[#allocation5 + $0x1e8] sm:$0xff] }
  0xe1   : > { %3180 = vmatprep.mubr.f32.mxu0 %v4266_v8  ;;  %3413 = vmatprep.subr.bf16.mxu1 %v3412_v21  ;;  %v892_v52 = vld [vmem:[#allocation5 + $0x1e0] sm:$0xff] }
  0xe2   : > { %2957 = vmatmul.mubr.f32.vlgmr.msra.gmra.mrb[0].mxu1 %v636_v34  ;;  %3541 = vmatprep.subr.bf16.mxu0 %v3540_v23 }
  0xe3   : > { %3181 = vmatmul.mubr.f32.vlgmr.msra.gmra.mrb[0].mxu0 %v4274_v14  ;;  %3415 = vmatpush3.bf16.msra.mxu1 %v3412_v21  ;;  %v889_v21 = vld [vmem:[#allocation5 + $0x1c8] sm:$0xff] }
  0xe4   : > { %3543 = vmatpush3.bf16.msra.mxu0 %v3540_v23  ;;  %2959 = vmatprep.mubr.f32.mxu1 %v4364_v15  ;;  %v3424_v15 = vpack.c.bf16 %v887_v6, %v886_v2  ;;  %v1794_v23 = vld [vmem:[#allocation5 + $0x3c0] sm:$0xff]  ;;  %v3428_v33 = vpack.c.bf16 %v889_v21, %v888_v19  ;;  %v3436_v2 = vpack.c.bf16 %v893_v61, %v892_v52  ;;  %v1801_v19 = vld [vmem:[#allocation5 + $0x3f8] sm:$0xff]  ;;  %v2017_v61 = vld [vmem:[#allocation5 + $0x428] sm:$0xff] }
  0xe5   : > { %3183 = vmatprep.mubr.f32.mxu0 %v4282_v18  ;;  %3417 = vmatprep.subr.bf16.mxu1 %v3416_v43  ;;  %v3556_v34 = vpack.c.bf16 %v1795_v30, %v1794_v23  ;;  %v4467_v6 = vld [vmem:[%s4239_s23 + $0xc0] sm:$0xff]  ;;  %v4472_v21 = vld [vmem:[%s4239_s23 + $0xc8] sm:$0xff]  ;;  %v2478_v30 = vld [vmem:[%s4239_s23 + $0xd8] sm:$0xff] }
  0xe6   : > { %2960 = vmatmul.mubr.f32.gmra.mrb[2].mxu1 %v4369_v26  ;;  %3545 = vmatprep.subr.bf16.mxu0 %v3544_v47  ;;  %v3552_v26 = vpack.c.bf16 %v1793_v13, %v1792_v12  ;;  %v894_v13 = vld [vmem:[#allocation5 + $0x1f0] sm:$0xff]  ;;  %v2016_v52 = vld [vmem:[#allocation5 + $0x420] sm:$0xff] }
  0xe7   : > { %3184 = vmatmul.mubr.f32.gmra.mrb[2].mxu0 %v4290_v24  ;;  %3419 = vmatpush3.bf16.msra.mxu1 %v3416_v43  ;;  %v1796_v43 = vld [vmem:[#allocation5 + $0x3d0] sm:$0xff] }
  0xe8   : > { %3547 = vmatpush3.bf16.msra.mxu0 %v3544_v47  ;;  %2962 = vmatprep.mubr.f32.mxu1 %v4373_v32  ;;  %v1797_v47 = vld [vmem:[#allocation5 + $0x3d8] sm:$0xff] }
  0xe9   : > { %3186 = vmatprep.mubr.f32.mxu0 %v4298_v28  ;;  %3421 = vmatprep.subr.bf16.mxu1 %v3420_v57  ;;  %v3560_v29 = vpack.c.bf16 %v1797_v47, %v1796_v43  ;;  %v2014_v47 = vld [vmem:[#allocation5 + $0x410] sm:$0xff] }
  0xea   : > { %2963 = vmatmul.mubr.f32.gmra.mrb[4].mxu1 %v4378_v42  ;;  %3549 = vmatprep.subr.bf16.mxu0 %v3548_v1 }
  0xeb   : > { %3187 = vmatmul.mubr.f32.gmra.mrb[4].mxu0 %v4306_v35  ;;  %3423 = vmatpush3.bf16.msra.mxu1 %v3420_v57  ;;  %v1798_v57 = vld [vmem:[#allocation5 + $0x3e0] sm:$0xff] }
  0xec   : > { %3551 = vmatpush3.bf16.msra.mxu0 %v3548_v1  ;;  %2965 = vmatprep.mubr.f32.mxu1 %v4383_v44  ;;  %v1799_v1 = vld [vmem:[#allocation5 + $0x3e8] sm:$0xff] }
  0xed   : > { %3189 = vmatprep.mubr.f32.mxu0 %v4314_v39  ;;  %3425 = vmatprep.subr.bf16.mxu1 %v3424_v15  ;;  %v3564_v12 = vpack.c.bf16 %v1799_v1, %v1798_v57  ;;  %v3580_v57 = vpack.c.bf16 %v2017_v61, %v2016_v52 }
  0xee   : > { %2966 = vmatmul.mubr.f32.gmra.mrb[6].mxu1 %v4388_v53  ;;  %3553 = vmatprep.subr.bf16.mxu0 %v3552_v26 }
  0xef   : > { %3190 = vmatmul.mubr.f32.gmra.mrb[6].mxu0 %v4322_v45  ;;  %3427 = vmatpush3.bf16.msra.mxu1 %v3424_v15  ;;  %v895_v15 = vld [vmem:[#allocation5 + $0x1f8] sm:$0xff] }
  0xf0   : > { %3555 = vmatpush3.bf16.msra.mxu0 %v3552_v26  ;;  %2968 = vmatprep.mubr.f32.mxu1 %v4393_v54  ;;  %v1800_v26 = vld [vmem:[#allocation5 + $0x3f0] sm:$0xff]  ;;  %v3440_v23 = vpack.c.bf16 %v895_v15, %v894_v13 }
  0xf1   : > { %3192 = vmatprep.mubr.f32.mxu0 %v4330_v49  ;;  %3429 = vmatprep.subr.bf16.mxu1 %v3428_v33 }
  0xf2   : > { %2969 = vmatmul.mubr.f32.gmra.mrb[8].mxu1 %v4398_v3  ;;  %3557 = vmatprep.subr.bf16.mxu0 %v3556_v34 }
  0xf3   : > { %3193 = vmatmul.mubr.f32.gmra.mrb[8].mxu0 %v4338_v55  ;;  %3431 = vmatpush3.bf16.msra.mxu1 %v3428_v33  ;;  %v3568_v33 = vpack.c.bf16 %v1801_v19, %v1800_v26 }
  0xf4   : > { %3559 = vmatpush3.bf16.msra.mxu0 %v3556_v34  ;;  %2971 = vmatprep.mubr.f32.mxu1 %v4403_v9  ;;  %v2012_v34 = vld [vmem:[#allocation5 + $0x400] sm:$0xff] }
  0xf5   : > { %3195 = vmatprep.mubr.f32.mxu0 %v4346_v59  ;;  %3433 = vmatprep.subr.bf16.mxu1 %v3432_v50  ;;  %v3572_v43 = vpack.c.bf16 %v2013_v36, %v2012_v34 }
  0xf6   : > { %2972 = vmatmul.mubr.f32.gmra.mrb[10].mxu1 %v4408_v22  ;;  %3561 = vmatprep.subr.bf16.mxu0 %v3560_v29 }
  0xf7   : > { %3196 = vmatmul.mubr.f32.gmra.mrb[10].mxu0 %v4354_v5  ;;  %3435 = vmatpush3.bf16.msra.mxu1 %v3432_v50  ;;  %v2015_v50 = vld [vmem:[#allocation5 + $0x418] sm:$0xff] }
  0xf8   : > { %3563 = vmatpush3.bf16.msra.mxu0 %v3560_v29  ;;  %2974 = vmatprep.mubr.f32.mxu1 %v4413_v25  ;;  %v3576_v29 = vpack.c.bf16 %v2015_v50, %v2014_v47 }
  0xf9   : > { %3198 = vmatprep.mubr.f32.mxu0 %v4467_v6  ;;  %3437 = vmatprep.subr.bf16.mxu1 %v3436_v2 }
  0xfa   : > { %2975 = vmatmul.mubr.f32.gmra.mrb[12].mxu1 %v4418_v40  ;;  %3565 = vmatprep.subr.bf16.mxu0 %v3564_v12 }
  0xfb   : > { %3199 = vmatmul.mubr.f32.gmra.mrb[12].mxu0 %v4472_v21  ;;  %3439 = vmatpush3.bf16.msra.mxu1 %v3436_v2 }
  0xfc   : > { %3567 = vmatpush3.bf16.msra.mxu0 %v3564_v12  ;;  %2977 = vmatprep.mubr.f32.mxu1 %v4423_v46 }
  0xfd   : > { %3201 = vmatprep.mubr.f32.mxu0 %v2478_v30  ;;  %3441 = vmatprep.subr.bf16.mxu1 %v3440_v23 }
  0xfe   : > { %2978 = vmatmul.mubr.f32.gmra.mrb[14].mxu1 %v4428_v56  ;;  %3569 = vmatprep.subr.bf16.mxu0 %v3568_v33 }
  0xff   : > { %3202 = vmatmul.mubr.f32.gmra.mrb[14].mxu0 %v2479_v37  ;;  %3443 = vmatpush3.bf16.msra.mxu1 %v3440_v23  ;;  %v4540_v23 = vld [vmem:[%s4644_s2] ss:$0 sm:$0xff] }
 0x100   : > { %3571 = vmatpush3.bf16.msra.mxu0 %v3568_v33  ;;  %3012 = vmatprep.mubr.f32.mxu1 %v4251_v62  ;;  %v2018_v62 = vld [vmem:[#allocation5 + $0x430] sm:$0xff] }
 0x101   : > { %3236 = vmatprep.mubr.f32.mxu0 %v4254_v0  ;;  %3573 = vmatprep.subr.bf16.mxu0 %v3572_v43  ;;  %v2019_v0 = vld [vmem:[#allocation5 + $0x438] sm:$0xff] }
 0x102   : > { %3013 = vmatmul.mubr.f32.vlgmr.msra.gmra.mrb[0].mxu1 %v4258_v4  ;;  %3604 = vmatprep.subr.bf16.mxu1 %v3572_v43  ;;  %v3584_v4 = vpack.c.bf16 %v2019_v0, %v2018_v62 }
 0x103   : > { %3237 = vmatmul.mubr.f32.vlgmr.msra.gmra.mrb[0].mxu0 %v4262_v7  ;;  %3612 = vmatpush3.bf16.msra.mxu1 %v3572_v43  ;;  %v2020_v7 = vld [vmem:[#allocation5 + $0x440] sm:$0xff] }
 0x104   : > { %3575 = vmatpush3.bf16.msra.mxu0 %v3572_v43  ;;  %3015 = vmatprep.mubr.f32.mxu1 %v4266_v8  ;;  %v2021_v8 = vld [vmem:[#allocation5 + $0x448] sm:$0xff] }
 0x105   : > { %3239 = vmatprep.mubr.f32.mxu0 %v4270_v10  ;;  %3577 = vmatprep.subr.bf16.mxu0 %v3576_v29  ;;  %v3588_v10 = vpack.c.bf16 %v2021_v8, %v2020_v7 }
 0x106   : > { %3016 = vmatmul.mubr.f32.gmra.mrb[2].mxu1 %v4274_v14  ;;  %3605 = vmatprep.subr.bf16.mxu1 %v3576_v29  ;;  %v2022_v14 = vld [vmem:[#allocation5 + $0x450] sm:$0xff] }
 0x107   : > { %3240 = vmatmul.mubr.f32.gmra.mrb[2].mxu0 %v4278_v17  ;;  %3613 = vmatpush3.bf16.msra.mxu1 %v3576_v29  ;;  %v2023_v17 = vld [vmem:[#allocation5 + $0x458] sm:$0xff] }
 0x108   : > { %3579 = vmatpush3.bf16.msra.mxu0 %v3576_v29  ;;  %3018 = vmatprep.mubr.f32.mxu1 %v4282_v18  ;;  %v3592_v18 = vpack.c.bf16 %v2023_v17, %v2022_v14 }
 0x109   : > { %3242 = vmatprep.mubr.f32.mxu0 %v4286_v20  ;;  %3581 = vmatprep.subr.bf16.mxu0 %v3580_v57  ;;  %v2024_v20 = vld [vmem:[#allocation5 + $0x460] sm:$0xff] }
 0x10a   : > { %3019 = vmatmul.mubr.f32.gmra.mrb[4].mxu1 %v4290_v24  ;;  %3606 = vmatprep.subr.bf16.mxu1 %v3580_v57  ;;  %v2025_v24 = vld [vmem:[#allocation5 + $0x468] sm:$0xff] }
 0x10b   : > { %3243 = vmatmul.mubr.f32.gmra.mrb[4].mxu0 %v4294_v27  ;;  %3614 = vmatpush3.bf16.msra.mxu1 %v3580_v57  ;;  %v3596_v27 = vpack.c.bf16 %v2025_v24, %v2024_v20 }
 0x10c   : > { %3583 = vmatpush3.bf16.msra.mxu0 %v3580_v57  ;;  %3021 = vmatprep.mubr.f32.mxu1 %v4298_v28  ;;  %v2026_v28 = vld [vmem:[#allocation5 + $0x470] sm:$0xff] }
 0x10d   : > { %3245 = vmatprep.mubr.f32.mxu0 %v4302_v31  ;;  %3585 = vmatprep.subr.bf16.mxu0 %v3584_v4  ;;  %v2027_v31 = vld [vmem:[#allocation5 + $0x478] sm:$0xff] }
 0x10e   : > { %3022 = vmatmul.mubr.f32.gmra.mrb[6].mxu1 %v4306_v35  ;;  %3607 = vmatprep.subr.bf16.mxu1 %v3584_v4  ;;  %v3600_v35 = vpack.c.bf16 %v2027_v31, %v2026_v28 }
 0x10f   : > { %3246 = vmatmul.mubr.f32.gmra.mrb[6].mxu0 %v4310_v38  ;;  %3615 = vmatpush3.bf16.msra.mxu1 %v3584_v4  ;;  %v2494_v38 = vld [vmem:[%s4239_s23 + $0xd9] sm:$0xff] }
 0x110   : > { %3587 = vmatpush3.bf16.msra.mxu0 %v3584_v4  ;;  %3024 = vmatprep.mubr.f32.mxu1 %v4314_v39  ;;  %v2495_v39 = vld [vmem:[%s4239_s23 + $0xe1] sm:$0xff] }
 0x111   : > { %3248 = vmatprep.mubr.f32.mxu0 %v4318_v41  ;;  %3589 = vmatprep.subr.bf16.mxu0 %v3588_v10  ;;  %v2510_v41 = vld [vmem:[%s4239_s23 + $0xda] sm:$0xff] }
 0x112   : > { %3025 = vmatmul.mubr.f32.gmra.mrb[8].mxu1 %v4322_v45  ;;  %3608 = vmatprep.subr.bf16.mxu1 %v3588_v10  ;;  %v2511_v45 = vld [vmem:[%s4239_s23 + $0xe2] sm:$0xff] }
 0x113   : > { %3249 = vmatmul.mubr.f32.gmra.mrb[8].mxu0 %v4326_v48  ;;  %3616 = vmatpush3.bf16.msra.mxu1 %v3588_v10 }
 0x114   : > { %3591 = vmatpush3.bf16.msra.mxu0 %v3588_v10  ;;  %3027 = vmatprep.mubr.f32.mxu1 %v4330_v49 }
 0x115   : > { %3251 = vmatprep.mubr.f32.mxu0 %v4334_v51  ;;  %3593 = vmatprep.subr.bf16.mxu0 %v3592_v18 }
 0x116   : > { %3028 = vmatmul.mubr.f32.gmra.mrb[10].mxu1 %v4338_v55  ;;  %3609 = vmatprep.subr.bf16.mxu1 %v3592_v18 }
 0x117   : > { %3252 = vmatmul.mubr.f32.gmra.mrb[10].mxu0 %v4342_v58  ;;  %3617 = vmatpush3.bf16.msra.mxu1 %v3592_v18 }
 0x118   : > { %3595 = vmatpush3.bf16.msra.mxu0 %v3592_v18  ;;  %3030 = vmatprep.mubr.f32.mxu1 %v4346_v59 }
 0x119   : > { %3254 = vmatprep.mubr.f32.mxu0 %v4350_v63  ;;  %3597 = vmatprep.subr.bf16.mxu0 %v3596_v27 }
 0x11a   : > { %3031 = vmatmul.mubr.f32.gmra.mrb[12].mxu1 %v4354_v5  ;;  %3610 = vmatprep.subr.bf16.mxu1 %v3596_v27 }
 0x11b   : > { %3255 = vmatmul.mubr.f32.gmra.mrb[12].mxu0 %v4358_v11  ;;  %3618 = vmatpush3.bf16.msra.mxu1 %v3596_v27 }
 0x11c   : > { %3599 = vmatpush3.bf16.msra.mxu0 %v3596_v27  ;;  %3033 = vmatprep.mubr.f32.mxu1 %v4467_v6 }
 0x11d   : > { %3257 = vmatprep.mubr.f32.mxu0 %v2494_v38  ;;  %3601 = vmatprep.subr.bf16.mxu0 %v3600_v35 }
 0x11e   : > { %3034 = vmatmul.mubr.f32.gmra.mrb[14].mxu1 %v4472_v21  ;;  %3611 = vmatprep.subr.bf16.mxu1 %v3600_v35 }
 0x11f   : > { %3258 = vmatmul.mubr.f32.gmra.mrb[14].mxu0 %v2495_v39  ;;  %3619 = vmatpush3.bf16.msra.mxu1 %v3600_v35 }
 0x120   : > { %3603 = vmatpush3.bf16.msra.mxu0 %v3600_v35  ;;  %3292 = vmatprep.mubr.f32.mxu0 %v4373_v32 }
 0x121   : > { %3304 = vmatprep.mubr.f32.mxu1 %v4413_v25 }
 0x122   : > { %3305 = vmatmul.mubr.f32.vlgmr.msra.gmra.mrb[16].mxu1 %v4418_v40 }
 0x123   : > { %3293 = vmatmul.mubr.f32.vlgmr.msra.gmra.mrb[0].mxu0 %v4378_v42  ;;  %3307 = vmatprep.mubr.f32.mxu1 %v4423_v46 }
 0x124   : > { %3295 = vmatprep.mubr.f32.mxu0 %v4383_v44 }
 0x126   : > { %3308 = vmatmul.mubr.f32.gmra.mrb[18].mxu1 %v4428_v56 }
 0x127   : > { %3296 = vmatmul.mubr.f32.gmra.mrb[2].mxu0 %v4388_v53  ;;  %3310 = vmatprep.mubr.f32.mxu1 %v4433_v60 }
 0x128   : > { %3298 = vmatprep.mubr.f32.mxu0 %v4393_v54 }
 0x12a   : > { %3311 = vmatmul.mubr.f32.gmra.mrb[20].mxu1 %v4438_v16 }
 0x12b   : > { %3299 = vmatmul.mubr.f32.gmra.mrb[4].mxu0 %v4398_v3  ;;  %3313 = vmatprep.mubr.f32.mxu1 %v2510_v41 }
 0x12c   : > { %3301 = vmatprep.mubr.f32.mxu0 %v4403_v9 }
 0x12e   : > { %3314 = vmatmul.mubr.f32.gmra.mrb[22].mxu1 %v2511_v45 }
 0x12f   : > { %3302 = vmatmul.mubr.f32.gmra.mrb[6].mxu0 %v4408_v22 }
 0x1d5   : > { %v3014_v48 = vpop.f32.mrb[0].mxu1 }
 0x1d6   : > { %v962_v49 = vpop.f32.mrb[1].mxu1 }
 0x1d9   : > { %v3017_v51 = vpop.f32.mrb[2].mxu1 }
 0x1da   : > { %v972_v55 = vpop.f32.mrb[3].mxu1 }
 0x1dd   : > { %v4529_v58 = vpop.f32.mrb[4].mxu1 }
 0x1de   : > { %v4531_v59 = vpop.f32.mrb[5].mxu1 }
 0x1e1   : > { %v4533_v63 = vpop.f32.mrb[6].mxu1 }
 0x1e2   : > { %v4535_v5 = vpop.f32.mrb[7].mxu1 }
 0x1e5   : > { %v3026_v11 = vpop.f32.mrb[8].mxu1 }
 0x1e6   : > { %v3250_v32 = vpop.f32.mrb[8].mxu0  ;;  %v1002_v42 = vpop.f32.mrb[9].mxu1 }
 0x1e7   : > { %v3628_v44 = vadd.f32 %v3250_v32, %v3026_v11  ;;  %v1908_v53 = vpop.f32.mrb[9].mxu0 }
 0x1e8   : > { %v3630_v54 = vadd.f32 %v1908_v53, %v1002_v42 }
 0x1e9   : > { %v3029_v3 = vpop.f32.mrb[10].mxu1 }
 0x1ea   : > { %v3253_v9 = vpop.f32.mrb[10].mxu0  ;;  %v1012_v22 = vpop.f32.mrb[11].mxu1 }
 0x1eb   : > { %v3632_v25 = vadd.f32 %v3253_v9, %v3029_v3  ;;  %v1918_v40 = vpop.f32.mrb[11].mxu0 }
 0x1ec   : > { %v3634_v46 = vadd.f32 %v1918_v40, %v1012_v22 }
 0x1ed   : > { %v3032_v56 = vpop.f32.mrb[12].mxu1 }
 0x1ee   : > { %v3256_v60 = vpop.f32.mrb[12].mxu0  ;;  %v1022_v16 = vpop.f32.mrb[13].mxu1 }
 0x1ef   : > { %v3636_v1 = vadd.f32 %v3256_v60, %v3032_v56  ;;  %v1928_v2 = vpop.f32.mrb[13].mxu0 }
 0x1f0   : > { %v3638_v6 = vadd.f32 %v1928_v2, %v1022_v16 }
 0x1f1   : > { %v3035_v12 = vpop.f32.mrb[14].mxu1 }
 0x1f2   : > { %v3259_v13 = vpop.f32.mrb[14].mxu0  ;;  %v1032_v15 = vpop.f32.mrb[15].mxu1 }
 0x1f3   : > { %v3640_v26 = vadd.f32 %v3259_v13, %v3035_v12  ;;  %v1938_v19 = vpop.f32.mrb[15].mxu0 }
 0x1f4   : > { %v3642_v21 = vadd.f32 %v1938_v19, %v1032_v15 }
 0x1f5   : > { %v3306_v30 = vpop.f32.mrb[16].mxu1 }
 0x1f6   : > { %v3294_v33 = vpop.f32.mrb[0].mxu0  ;;  %v3629_v34 = vadd.f32 %v3628_v44, %v3306_v30  ;;  %v2134_v36 = vpop.f32.mrb[17].mxu1 }
 0x1f7   : > { %v3620_v37 = vadd.f32 %v3294_v33, %v3014_v48  ;;  %v2094_v43 = vpop.f32.mrb[1].mxu0  ;;  %v3631_v47 = vadd.f32 %v3630_v54, %v2134_v36 }
 0x1f8   : > { %v2253_v50 = vadd.f32 %v3629_v34, %v4540_v23  ;;  %v3621_v29 = vadd.f32 %v2094_v43, %v962_v49 }
 0x1f9   : > { %v2245_v52 = vadd.f32 %v3620_v37, %v4540_v23  ;;  %v2252_v61 = vadd.f32 %v3631_v47, %v4540_v23  ;;  %v3309_v57 = vpop.f32.mrb[18].mxu1 }
 0x1fa   : > { %2269 = vst [vmem:[%s4235_s17 + $0x48] sm:$0xff] %v2253_v50  ;;  %v2244_v62 = vadd.f32 %v3621_v29, %v4540_v23  ;;  %v3297_v0 = vpop.f32.mrb[2].mxu0  ;;  %v3633_v4 = vadd.f32 %v3632_v25, %v3309_v57  ;;  %v2144_v7 = vpop.f32.mrb[19].mxu1 }
 0x1fb   : > { %2261 = vst [vmem:[%s4235_s17 + $0x8] sm:$0xff] %v2245_v52  ;;  %2268 = vst [vmem:[%s4235_s17 + $0x40] sm:$0xff] %v2252_v61  ;;  %v3622_v8 = vadd.f32 %v3297_v0, %v3017_v51  ;;  %v2104_v10 = vpop.f32.mrb[3].mxu0  ;;  %v3635_v14 = vadd.f32 %v3634_v46, %v2144_v7 }
 0x1fc   : > { %2260 = vst [vmem:[%s4235_s17] sm:$0xff] %v2244_v62  ;;  %v2255_v17 = vadd.f32 %v3633_v4, %v4540_v23  ;;  %v3623_v18 = vadd.f32 %v2104_v10, %v972_v55 }
 0x1fd   : > { %v2247_v20 = vadd.f32 %v3622_v8, %v4540_v23  ;;  %v2254_v24 = vadd.f32 %v3635_v14, %v4540_v23  ;;  %v3312_v27 = vpop.f32.mrb[20].mxu1 }
 0x1fe   : > { %2271 = vst [vmem:[%s4235_s17 + $0x58] sm:$0xff] %v2255_v17  ;;  %v2246_v28 = vadd.f32 %v3623_v18, %v4540_v23  ;;  %v3300_v31 = vpop.f32.mrb[4].mxu0  ;;  %v3637_v35 = vadd.f32 %v3636_v1, %v3312_v27  ;;  %v2154_v38 = vpop.f32.mrb[21].mxu1 }
 0x1ff   : > { %2263 = vst [vmem:[%s4235_s17 + $0x18] sm:$0xff] %v2247_v20  ;;  %2270 = vst [vmem:[%s4235_s17 + $0x50] sm:$0xff] %v2254_v24  ;;  %v3624_v39 = vadd.f32 %v3300_v31, %v4529_v58  ;;  %v2114_v41 = vpop.f32.mrb[5].mxu0  ;;  %v3639_v45 = vadd.f32 %v3638_v6, %v2154_v38 }
 0x200   : > { %2262 = vst [vmem:[%s4235_s17 + $0x10] sm:$0xff] %v2246_v28  ;;  %v2257_v48 = vadd.f32 %v3637_v35, %v4540_v23  ;;  %v3625_v49 = vadd.f32 %v2114_v41, %v4531_v59 }
 0x201   : > { %v2249_v51 = vadd.f32 %v3624_v39, %v4540_v23  ;;  %v2256_v55 = vadd.f32 %v3639_v45, %v4540_v23  ;;  %v3315_v11 = vpop.f32.mrb[22].mxu1 }
 0x202   : > { %2273 = vst [vmem:[%s4235_s17 + $0x68] sm:$0xff] %v2257_v48  ;;  %v2248_v58 = vadd.f32 %v3625_v49, %v4540_v23  ;;  %v3303_v32 = vpop.f32.mrb[6].mxu0  ;;  %v3641_v42 = vadd.f32 %v3640_v26, %v3315_v11  ;;  %v2164_v44 = vpop.f32.mrb[23].mxu1 }
 0x203   : > { %2265 = vst [vmem:[%s4235_s17 + $0x28] sm:$0xff] %v2249_v51  ;;  %2272 = vst [vmem:[%s4235_s17 + $0x60] sm:$0xff] %v2256_v55  ;;  %v3626_v59 = vadd.f32 %v3303_v32, %v4533_v63  ;;  %v2124_v53 = vpop.f32.mrb[7].mxu0  ;;  %v3643_v54 = vadd.f32 %v3642_v21, %v2164_v44 }
 0x204   : > { %2264 = vst [vmem:[%s4235_s17 + $0x20] sm:$0xff] %v2248_v58  ;;  %v2259_v3 = vadd.f32 %v3641_v42, %v4540_v23  ;;  %v3627_v9 = vadd.f32 %v2124_v53, %v4535_v5 }
 0x205   : > { %v2251_v22 = vadd.f32 %v3626_v59, %v4540_v23  ;;  %v2258_v25 = vadd.f32 %v3643_v54, %v4540_v23 }
 0x206   : > { %2275 = vst [vmem:[%s4235_s17 + $0x78] sm:$0xff] %v2259_v3  ;;  %v2250_v63 = vadd.f32 %v3627_v9, %v4540_v23 }
 0x207   : > { %2267 = vst [vmem:[%s4235_s17 + $0x38] sm:$0xff] %v2251_v22  ;;  %2274 = vst [vmem:[%s4235_s17 + $0x70] sm:$0xff] %v2258_v25 }
 0x208   : > { %2266 = vst [vmem:[%s4235_s17 + $0x30] sm:$0xff] %v2250_v63 }
 0x209   : > { %3939 = shalt.err (!%p3936_p12)
}
 0x20a   : > { %s3940_s22 = scalar_lea.hbm %s4579_s4, 2048  ;;  %s3944_s5 = scalar_lea.hbm %s4645_s3, 8192 }
 0x20b   : > { %p3941_p2 = scmp.ne.s32.totalorder %s4579_s4, %s3940_s22  ;;  %p3945_p3 = scmp.lt.u32.totalorder %s4579_s4, %s4645_s3 }
 0x20c   : > { %p3946_p8 = scmp.lt.u32.totalorder %s3944_s5, %s3940_s22  ;;  %p3948_p6 = scmp.lt.u32.totalorder %s3940_s22, %s4579_s4 }
 0x20d   : > { %p3942_p5 = pnand %p3941_p2, %p4675_p7 }
 0x20e   : > { %p3947_p9 = por %p3946_p8, %p3945_p3 }
 0x20f   : > { %p3943_p0 = pneg %p3942_p5 }
 0x210   : > { %p3949_p11 = por %p3948_p6, %p3947_p9 }
 0x212   : > { %p3950_p13 = pnand %p3949_p11, %p3943_p0 }
 0x214   : > { %3953 = shalt.err (!%p3950_p13)
}
 0x215   : > { %s4033_s11 = smov 128   ;;  %s4034_s24 = smov 8  }
 0x216   : > { %3756 = dma.vmem_to_hbm [thread:$0]  (%p4675_p7), %s4581_s20, 2048, %s4579_s4, %s4590_s6, %s4033_s11, %s4033_s11, %s4034_s24  }
 0x217 PF: > { %p3770_p1 = scmp.ge.s32.totalorder %s4026_s19, 2  ;;  %s2308_s7 = sand.u32 1, %s3998_s12  }
 0x218   : > { %p4676_p4 = scmp.ne.s32.totalorder %s4663_s27, 0  ;;  %s2309_s30 = scalar_lea.sflag [#allocation7], %s2308_s7 }
 0x21a   : > { %p3763_p10 = pnand %p3770_p1, %p4676_p4 }
 0x21c   : > { %3993 = dma.done.wait (!%p3763_p10), %s2309_s30, 2048  }
 0x21d   : > { %3995 = vsyncadd (!%p3763_p10), %s2309_s30, 4294965248  ;;  %s17_s19 = sadd.s32 1, %s4026_s19   ;;  %s4677_s15 = sld [smem:[#allocation22_spill]] }
 0x21e   : > { %p14_p12 = scmp.ge.s32.totalorder %s17_s19, 6   ;;  %s4678_s16 = sld [smem:[#allocation18_spill]] }
 0x21f   : > { %s4679_s26 = sld [smem:[#allocation19_spill]]  ;;  %s4680_s17 = sld [smem:[#allocation20_spill]] }
 0x220   : > { %s4681_s18 = sld [smem:[#allocation21_spill]]  ;;  %s4682_s12 = smov %s4002_s13 }
 0x221   : > { %s4683_s13 = smov %s4006_s14  ;;  %16 = sbr.rel (!%p14_p12) target bundleno = 8 (0x8), region = 98 }
 0x223   : > { %s4684_s14 = smov %s4677_s15 }
 0x224   : > { %s4685_s15 = smov %s4678_s16 }
 0x225   : > { %s4686_s16 = smov %s4679_s26 }
 0x228   :  { %2314 = vsyncpa [#allocation6], 1 }
 0x229   :  { %2316 = vsyncpa [#allocation6 + $0x1], 1 }
 0x22a   :  { %2317 = vsyncpa [#allocation7], 1 }
 0x22b   :  { %2319 = vsyncpa [#allocation7 + $0x1], 1 }
 0x22c   :  { %2320 = vsyncmov [#allocation3] }
 0x22f   :  { %s2321_s27 = vpop.sfrf %2320 }
 0x230   :  { %p2520_p7 = scmp.ne.s32.totalorder %s2321_s27, 0 }
 0x232   :  { %2325 = shalt.err (%p2520_p7)  }
 0x233   :  { %2327 = vsyncmov [#allocation3 + $0x1] }
 0x236   :  { %s2328_s20 = vpop.sfrf %2327 }
 0x237   :  { %p2521_p2 = scmp.ne.s32.totalorder %s2328_s20, 0 }
 0x239   :  { %2332 = shalt.err (%p2521_p2)  }

</bundles_post_ra>
